<compile_context>
chip_gen: v5e
topology: v5e:2x2
jax: 0.10.0
libtpu: 0.0.40
codegen_flags: <defaults>
</compile_context>

<pallas_src>
import jax
import jax.numpy as jnp
from jax.experimental import pallas as pl
from jax.experimental.pallas import tpu as pltpu

BN_EPS = 1e-5
LANES = 128


# --------------------------- in-kernel helpers -------------------------------


def _zero_halo(pad_ref, hh, wh, c):
    """Zero only the 1-element halo ring of the (hh+2, wh+2, c) VMEM scratch.

    The interior is overwritten every grid step, so a full re-zero would be
    ~2x the necessary VPU store traffic.
    """
    dt = pad_ref.dtype
    pad_ref[0:1, :, :] = jnp.zeros((1, wh + 2, c), dt)
    pad_ref[hh + 1:hh + 2, :, :] = jnp.zeros((1, wh + 2, c), dt)
    pad_ref[:, 0:1, :] = jnp.zeros((hh + 2, 1, c), dt)
    pad_ref[:, wh + 1:wh + 2, :] = jnp.zeros((hh + 2, 1, c), dt)


def _conv3x3(pad_ref, w_ref, hh, wh, cin, cout):
    """3x3 conv over the zero-padded (hh+2, wh+2, cin) VMEM tile.

    Taps come from 3 column-shifted planes (one reshape each) + row slices.
    For small cin (9*cin <= 128) they are concatenated into a single im2col
    operand and contracted with ONE MXU matmul; otherwise fall back to 9
    accumulated matmuls, each contracting a dense K=cin.
    """
    planes = [pad_ref[:, dx:dx + wh, :].reshape((hh + 2) * wh, cin)
              for dx in range(3)]
    taps = [planes[dx][dy * wh:dy * wh + hh * wh, :]
            for dy in range(3) for dx in range(3)]
    kdim = 9 * cin
    if kdim <= LANES:
        pieces = list(taps)
        if kdim < LANES:  # explicit zeros (never rely on stale VMEM * 0)
            pieces.append(jnp.zeros((hh * wh, LANES - kdim), jnp.float32))
        cols = jnp.concatenate(pieces, axis=1)          # (H*W, 128) in registers
        return jnp.dot(cols, w_ref[...], preferred_element_type=jnp.float32)
    acc = jnp.zeros((hh * wh, cout), jnp.float32)
    for k, tap in enumerate(taps):
        acc = acc + jnp.dot(tap, w_ref[k], preferred_element_type=jnp.float32)
    return acc


def _store_outputs(acc, y_ref, st_ref, hh, wh, c):
    # BN partials [sum, sumsq] reduced from the live accumulator, one store;
    # then the pre-BN activation.
    ssum = jnp.sum(acc, axis=0, keepdims=True)
    ssq = jnp.sum(acc * acc, axis=0, keepdims=True)
    st_ref[...] = jnp.concatenate([ssum, ssq], axis=0).reshape(1, 2, c)
    y_ref[...] = acc.reshape(1, hh, wh, c)


# -------------------------------- kernels ------------------------------------


def pool_conv_kernel(x_ref, w_ref, y_ref, st_ref, xp_ref):
    # x_ref : (1, Hh, 2, Wh, 2*Cin)  2x2 pooling windows exposed by a free reshape
    # w_ref : (128, Cmid)            conv1 weights, im2col K layout (or (9,Cin,Cmid))
    # y_ref : (1, Hh, Wh, Cmid)      pre-BN conv1 output
    # st_ref: (1, 2, Cmid)           per-image [sum, sumsq]
    # xp_ref: (Hh+2, Wh+2, Cin)      VMEM scratch: zero halo + pooled interior
    hh, wh, cmid = y_ref.shape[1], y_ref.shape[2], y_ref.shape[3]
    cin = xp_ref.shape[2]

    # Fused 2x2 maxpool (H parity in a leading dim, W parity in lane halves).
    x = x_ref[0]                                         # (Hh, 2, Wh, 2*Cin)
    m = jnp.maximum(x[:, 0, :, :], x[:, 1, :, :])        # max over H parity
    pooled = jnp.maximum(m[:, :, :cin], m[:, :, cin:])   # max over W parity

    _zero_halo(xp_ref, hh, wh, cin)
    xp_ref[1:hh + 1, 1:wh + 1, :] = pooled               # pooled act stays in VMEM

    acc = _conv3x3(xp_ref, w_ref, hh, wh, cin, cmid)
    _store_outputs(acc, y_ref, st_ref, hh, wh, cmid)


def bn_conv_kernel(y_ref, sc_ref, sh_ref, w_ref, o_ref, st_ref, hp_ref):
    # Fused BN1-apply + ReLU + conv2 (+ BN2 partial stats); the activated
    # layer-1 output never round-trips HBM.
    hh, wh, cout = o_ref.shape[1], o_ref.shape[2], o_ref.shape[3]
    cmid = hp_ref.shape[2]

    yv = y_ref[...].reshape(hh * wh, cmid)
    h = jnp.maximum(yv * sc_ref[...] + sh_ref[...], 0.0)

    _zero_halo(hp_ref, hh, wh, cmid)
    hp_ref[1:hh + 1, 1:wh + 1, :] = h.reshape(hh, wh, cmid)

    acc = _conv3x3(hp_ref, w_ref, hh, wh, cmid, cout)
    _store_outputs(acc, o_ref, st_ref, hh, wh, cout)


def bn_relu_kernel(y_ref, sc_ref, sh_ref, o_ref):
    # Final BN2-apply + ReLU; only real cout channels exist, nothing discarded.
    _, hh, wh, c = y_ref.shape
    yv = y_ref[...].reshape(hh * wh, c)
    o_ref[...] = jnp.maximum(yv * sc_ref[...] + sh_ref[...], 0.0).reshape(1, hh, wh, c)


# ------------------------------- wrappers -------------------------------------


def _prep_weight(w_oihw):
    # OIHW -> tap-major.  For 9*cin <= 128, flatten K=(tap, cin) and zero-pad K
    # to the native 128-lane contraction (tiny: weights only, never activations).
    co, ci, kh, kw = w_oihw.shape
    w = jnp.transpose(w_oihw, (2, 3, 1, 0)).astype(jnp.float32)   # (kh, kw, ci, co)
    kdim = kh * kw * ci
    if kdim <= LANES:
        return jnp.pad(w.reshape(kdim, co), ((0, LANES - kdim), (0, 0)))
    return w.reshape(kh * kw, ci, co)


def _bn_scale_shift(stats, gamma, beta, count):
    # stats: (N, 2, C) per-image [sum, sumsq] -> training-mode BN scale/shift
    # (biased variance, eps=1e-5), matching PyTorch BatchNorm2d in train().
    # TODO(synk): single-pass E[x^2]-E[x]^2 can cancel for large-magnitude
    # activations; use a shifted/two-pass reduction for big layers.
    s = jnp.sum(stats, axis=0)
    mean = s[0] / count
    var = jnp.maximum(s[1] / count - mean * mean, 0.0)
    scale = gamma.astype(jnp.float32) * jax.lax.rsqrt(var + BN_EPS)
    shift = beta.astype(jnp.float32) - mean * scale
    return scale.reshape(1, -1), shift.reshape(1, -1)


def _compiler_params(block_elems, scratch_elems):
    # Scoped-VMEM limit derived from the actual (double-buffered) f32 block
    # sizes, capped under v7x's 64 MiB physical VMEM (v5e/v6e could go higher
    # for larger H-bands).
    est = (2 * block_elems + scratch_elems) * 4
    limit = int(min(64 * 2**20, max(32 * 2**20, 4 * est)))
    return pltpu.CompilerParams(
        dimension_semantics=("parallel",),
        vmem_limit_bytes=limit,
    )


@jax.jit
def down_forward(x_nchw, params):
    """Down.forward: MaxPool2d(2) -> (Conv3x3 -> BN -> ReLU) x 2.  NCHW in/out."""
    n, cin, h, w = x_nchw.shape
    cmid = params["w1"].shape[0]
    cout = params["w2"].shape[0]
    hh, wh = h // 2, w // 2

    # Layout glue: NCHW -> NHWC (channels keep their real width -- no HBM lane
    # padding) and expose the 2x2 pooling windows via a free row-major reshape.
    x = jnp.transpose(x_nchw, (0, 2, 3, 1)).astype(jnp.float32)
    xr = x.reshape(n, hh, 2, wh, 2 * cin)

    w1p = _prep_weight(params["w1"])
    w2p = _prep_weight(params["w2"])

    # --- kernel A: fused maxpool + conv1 + BN1 partial stats ------------------
    blk_a = hh * 2 * wh * 2 * cin + w1p.size + hh * wh * cmid + 2 * cmid
    y1, st1 = pl.pallas_call(
        pool_conv_kernel,
        grid=(n,),
        in_specs=[
            pl.BlockSpec((1, hh, 2, wh, 2 * cin), lambda i: (i, 0, 0, 0, 0)),
            pl.BlockSpec(w1p.shape, lambda i: (0,) * w1p.ndim),
        ],
        out_specs=(
            pl.BlockSpec((1, hh, wh, cmid), lambda i: (i, 0, 0, 0)),
            pl.BlockSpec((1, 2, cmid), lambda i: (i, 0, 0)),
        ),
        out_shape=(
            jax.ShapeDtypeStruct((n, hh, wh, cmid), jnp.float32),
            jax.ShapeDtypeStruct((n, 2, cmid), jnp.float32),
        ),
        scratch_shapes=[pltpu.VMEM((hh + 2, wh + 2, cin), jnp.float32)],
        compiler_params=_compiler_params(blk_a, (hh + 2) * (wh + 2) * cin),
    )(xr, w1p)

    sc1, sh1 = _bn_scale_shift(st1, params["g1"], params["b1"], n * hh * wh)

    # --- kernel B: fused BN1-apply + ReLU + conv2 + BN2 partial stats ---------
    blk_b = hh * wh * cmid + 2 * cmid + w2p.size + hh * wh * cout + 2 * cout
    y2, st2 = pl.pallas_call(
        bn_conv_kernel,
        grid=(n,),
        in_specs=[
            pl.BlockSpec((1, hh, wh, cmid), lambda i: (i, 0, 0, 0)),
            pl.BlockSpec((1, cmid), lambda i: (0, 0)),
            pl.BlockSpec((1, cmid), lambda i: (0, 0)),
            pl.BlockSpec(w2p.shape, lambda i: (0,) * w2p.ndim),
        ],
        out_specs=(
            pl.BlockSpec((1, hh, wh, cout), lambda i: (i, 0, 0, 0)),
            pl.BlockSpec((1, 2, cout), lambda i: (i, 0, 0)),
        ),
        out_shape=(
            jax.ShapeDtypeStruct((n, hh, wh, cout), jnp.float32),
            jax.ShapeDtypeStruct((n, 2, cout), jnp.float32),
        ),
        scratch_shapes=[pltpu.VMEM((hh + 2, wh + 2, cmid), jnp.float32)],
        compiler_params=_compiler_params(blk_b, (hh + 2) * (wh + 2) * cmid),
    )(y1, sc1, sh1, w2p)

    sc2, sh2 = _bn_scale_shift(st2, params["g2"], params["b2"], n * hh * wh)

    # --- kernel C: BN2-apply + ReLU -------------------------------------------
    # TODO(synk): fuse this elementwise pass into Down's consumer (or emit NCHW
    # directly from the out_spec) when this block is embedded in a network.
    blk_c = 2 * hh * wh * cout + 2 * cout
    out = pl.pallas_call(
        bn_relu_kernel,
        grid=(n,),
        in_specs=[
            pl.BlockSpec((1, hh, wh, cout), lambda i: (i, 0, 0, 0)),
            pl.BlockSpec((1, cout), lambda i: (0, 0)),
            pl.BlockSpec((1, cout), lambda i: (0, 0)),
        ],
        out_specs=pl.BlockSpec((1, hh, wh, cout), lambda i: (i, 0, 0, 0)),
        out_shape=jax.ShapeDtypeStruct((n, hh, wh, cout), jnp.float32),
        compiler_params=_compiler_params(blk_c, 0),
    )(y2, sc2, sh2)

    return jnp.transpose(out, (0, 3, 1, 2))  # NHWC -> NCHW (caller's format)


# --------------------------- pure-JAX reference -------------------------------


def reference_down(x, params):
    p = jax.lax.reduce_window(
        x, -jnp.inf, jax.lax.max, (1, 1, 2, 2), (1, 1, 2, 2), "VALID"
    )

    def conv_bn_relu(h, w, g, b):
        y = jax.lax.conv_general_dilated(
            h, w, (1, 1), ((1, 1), (1, 1)),
            dimension_numbers=("NCHW", "OIHW", "NCHW"),
        )
        mean = jnp.mean(y, axis=(0, 2, 3), keepdims=True)
        var = jnp.mean((y - mean) ** 2, axis=(0, 2, 3), keepdims=True)
        yhat = (y - mean) / jnp.sqrt(var + BN_EPS)
        return jnp.maximum(yhat * g.reshape(1, -1, 1, 1) + b.reshape(1, -1, 1, 1), 0.0)

    h = conv_bn_relu(p, params["w1"], params["g1"], params["b1"])
    return conv_bn_relu(h, params["w2"], params["g2"], params["b2"])


# ----------------------------------- main --------------------------------------

if __name__ == "__main__":
    key = jax.random.PRNGKey(0)
    kx, k1, k2, kg1, kb1, kg2, kb2 = jax.random.split(key, 7)

    # Down(in_channels=4, out_channels=8); DoubleConv mid == out == 8.
    N, Cin, H, W = 2, 4, 16, 16
    Cout = 8

    x = jax.random.normal(kx, (N, Cin, H, W), jnp.float32)
    params = {
        "w1": 0.2 * jax.random.normal(k1, (Cout, Cin, 3, 3), jnp.float32),
        "g1": 1.0 + 0.1 * jax.random.normal(kg1, (Cout,), jnp.float32),
        "b1": 0.1 * jax.random.normal(kb1, (Cout,), jnp.float32),
        "w2": 0.2 * jax.random.normal(k2, (Cout, Cout, 3, 3), jnp.float32),
        "g2": 1.0 + 0.1 * jax.random.normal(kg2, (Cout,), jnp.float32),
        "b2": 0.1 * jax.random.normal(kb2, (Cout,), jnp.float32),
    }

    out = jax.block_until_ready(down_forward(x, params))
    ref = jax.block_until_ready(reference_down(x, params))

    assert out.shape == (N, Cout, H // 2, W // 2), out.shape
    max_err = float(jnp.max(jnp.abs(out - ref)))
    assert jnp.allclose(out, ref, atol=1e-3, rtol=1e-3), f"max_err={max_err}"

    print("KERNEL_OK")
</pallas_src>

<mosaic_0001>
module attributes {stable_mosaic.version = 11 : i64} {
  func.func @pool_conv_kernel(%arg0: i32, %arg1: memref<1x8x2x8x8xf32, #tpu.memory_space<vmem>>, %arg2: memref<128x8xf32, #tpu.memory_space<vmem>>, %arg3: memref<1x8x8x8xf32, #tpu.memory_space<vmem>>, %arg4: memref<1x2x8xf32, #tpu.memory_space<vmem>>, %arg5: memref<10x10x4xf32, #tpu.memory_space<vmem>>) attributes {dimension_semantics = [#tpu.dimension_semantics<parallel>], iteration_bounds = array<i64: 2>, scalar_prefetch = 0 : i64, scratch_operands = 1 : i64, tpu.core_type = #tpu.core_type<tc>, window_params = [{transform_indices = @transform_0, window_bounds = array<i64: 1, 8, 2, 8, 8>}, {pipeline_mode = #tpu.pipeline_mode<synchronous>, transform_indices = @transform_1, window_bounds = array<i64: 128, 8>}, {transform_indices = @transform_2, window_bounds = array<i64: 1, 8, 8, 8>}, {transform_indices = @transform_3, window_bounds = array<i64: 1, 2, 8>}]} {
    %c0 = arith.constant 0 : index
    %c0_0 = arith.constant 0 : index
    %c0_1 = arith.constant 0 : index
    %c0_2 = arith.constant 0 : index
    %c0_3 = arith.constant 0 : index
    %0 = vector.load %arg1[%c0, %c0_0, %c0_1, %c0_2, %c0_3] : memref<1x8x2x8x8xf32, #tpu.memory_space<vmem>>, vector<1x8x2x8x8xf32>
    %1 = vector.shape_cast %0 : vector<1x8x2x8x8xf32> to vector<8x2x8x8xf32>
    %2 = vector.extract_strided_slice %1 {offsets = [0, 0, 0, 0], sizes = [8, 1, 8, 8], strides = [1, 1, 1, 1]} : vector<8x2x8x8xf32> to vector<8x1x8x8xf32>
    %3 = vector.shape_cast %2 : vector<8x1x8x8xf32> to vector<8x8x8xf32>
    %4 = vector.extract_strided_slice %1 {offsets = [0, 1, 0, 0], sizes = [8, 1, 8, 8], strides = [1, 1, 1, 1]} : vector<8x2x8x8xf32> to vector<8x1x8x8xf32>
    %5 = vector.shape_cast %4 : vector<8x1x8x8xf32> to vector<8x8x8xf32>
    %6 = arith.maximumf %3, %5 : vector<8x8x8xf32>
    %7 = vector.extract_strided_slice %6 {offsets = [0, 0, 0], sizes = [8, 8, 4], strides = [1, 1, 1]} : vector<8x8x8xf32> to vector<8x8x4xf32>
    %8 = vector.extract_strided_slice %6 {offsets = [0, 0, 4], sizes = [8, 8, 4], strides = [1, 1, 1]} : vector<8x8x8xf32> to vector<8x8x4xf32>
    %9 = arith.maximumf %7, %8 : vector<8x8x4xf32>
    %cst = arith.constant 0.000000e+00 : f32
    %10 = vector.broadcast %cst : f32 to vector<1x10x4xf32>
    %c0_4 = arith.constant 0 : index
    %c0_5 = arith.constant 0 : index
    %c0_6 = arith.constant 0 : index
    %11 = vector.load %arg5[%c0_4, %c0_5, %c0_6] : memref<10x10x4xf32, #tpu.memory_space<vmem>>, vector<1x10x4xf32>
    tpu.vector_store %arg5[%c0_4, %c0_5, %c0_6], %10 {strides = array<i32>} : memref<10x10x4xf32, #tpu.memory_space<vmem>>, vector<1x10x4xf32>,
    %cst_7 = arith.constant 0.000000e+00 : f32
    %12 = vector.broadcast %cst_7 : f32 to vector<1x10x4xf32>
    %c9 = arith.constant 9 : index
    %c0_8 = arith.constant 0 : index
    %c0_9 = arith.constant 0 : index
    %13 = vector.load %arg5[%c9, %c0_8, %c0_9] : memref<10x10x4xf32, #tpu.memory_space<vmem>>, vector<1x10x4xf32>
    tpu.vector_store %arg5[%c9, %c0_8, %c0_9], %12 {strides = array<i32>} : memref<10x10x4xf32, #tpu.memory_space<vmem>>, vector<1x10x4xf32>,
    %cst_10 = arith.constant 0.000000e+00 : f32
    %14 = vector.broadcast %cst_10 : f32 to vector<10x1x4xf32>
    %c0_11 = arith.constant 0 : index
    %c0_12 = arith.constant 0 : index
    %c0_13 = arith.constant 0 : index
    %15 = vector.load %arg5[%c0_11, %c0_12, %c0_13] : memref<10x10x4xf32, #tpu.memory_space<vmem>>, vector<10x1x4xf32>
    tpu.vector_store %arg5[%c0_11, %c0_12, %c0_13], %14 {strides = array<i32>} : memref<10x10x4xf32, #tpu.memory_space<vmem>>, vector<10x1x4xf32>,
    %cst_14 = arith.constant 0.000000e+00 : f32
    %16 = vector.broadcast %cst_14 : f32 to vector<10x1x4xf32>
    %c0_15 = arith.constant 0 : index
    %c9_16 = arith.constant 9 : index
    %c0_17 = arith.constant 0 : index
    %17 = vector.load %arg5[%c0_15, %c9_16, %c0_17] : memref<10x10x4xf32, #tpu.memory_space<vmem>>, vector<10x1x4xf32>
    tpu.vector_store %arg5[%c0_15, %c9_16, %c0_17], %16 {strides = array<i32>} : memref<10x10x4xf32, #tpu.memory_space<vmem>>, vector<10x1x4xf32>,
    %c1 = arith.constant 1 : index
    %c1_18 = arith.constant 1 : index
    %c0_19 = arith.constant 0 : index
    %18 = vector.load %arg5[%c1, %c1_18, %c0_19] : memref<10x10x4xf32, #tpu.memory_space<vmem>>, vector<8x8x4xf32>
    tpu.vector_store %arg5[%c1, %c1_18, %c0_19], %9 {strides = array<i32>} : memref<10x10x4xf32, #tpu.memory_space<vmem>>, vector<8x8x4xf32>,
    %c0_20 = arith.constant 0 : index
    %c0_21 = arith.constant 0 : index
    %c0_22 = arith.constant 0 : index
    %19 = vector.load %arg5[%c0_20, %c0_21, %c0_22] : memref<10x10x4xf32, #tpu.memory_space<vmem>>, vector<10x8x4xf32>
    %20 = vector.shape_cast %19 : vector<10x8x4xf32> to vector<80x4xf32>
    %c0_23 = arith.constant 0 : index
    %c1_24 = arith.constant 1 : index
    %c0_25 = arith.constant 0 : index
    %21 = vector.load %arg5[%c0_23, %c1_24, %c0_25] : memref<10x10x4xf32, #tpu.memory_space<vmem>>, vector<10x8x4xf32>
    %22 = vector.shape_cast %21 : vector<10x8x4xf32> to vector<80x4xf32>
    %c0_26 = arith.constant 0 : index
    %c2 = arith.constant 2 : index
    %c0_27 = arith.constant 0 : index
    %23 = vector.load %arg5[%c0_26, %c2, %c0_27] : memref<10x10x4xf32, #tpu.memory_space<vmem>>, vector<10x8x4xf32>
    %24 = vector.shape_cast %23 : vector<10x8x4xf32> to vector<80x4xf32>
    %25 = vector.extract_strided_slice %20 {offsets = [0, 0], sizes = [64, 4], strides = [1, 1]} : vector<80x4xf32> to vector<64x4xf32>
    %26 = vector.extract_strided_slice %22 {offsets = [0, 0], sizes = [64, 4], strides = [1, 1]} : vector<80x4xf32> to vector<64x4xf32>
    %27 = vector.extract_strided_slice %24 {offsets = [0, 0], sizes = [64, 4], strides = [1, 1]} : vector<80x4xf32> to vector<64x4xf32>
    %28 = vector.extract_strided_slice %20 {offsets = [8, 0], sizes = [64, 4], strides = [1, 1]} : vector<80x4xf32> to vector<64x4xf32>
    %29 = vector.extract_strided_slice %22 {offsets = [8, 0], sizes = [64, 4], strides = [1, 1]} : vector<80x4xf32> to vector<64x4xf32>
    %30 = vector.extract_strided_slice %24 {offsets = [8, 0], sizes = [64, 4], strides = [1, 1]} : vector<80x4xf32> to vector<64x4xf32>
    %31 = vector.extract_strided_slice %20 {offsets = [16, 0], sizes = [64, 4], strides = [1, 1]} : vector<80x4xf32> to vector<64x4xf32>
    %32 = vector.extract_strided_slice %22 {offsets = [16, 0], sizes = [64, 4], strides = [1, 1]} : vector<80x4xf32> to vector<64x4xf32>
    %33 = vector.extract_strided_slice %24 {offsets = [16, 0], sizes = [64, 4], strides = [1, 1]} : vector<80x4xf32> to vector<64x4xf32>
    %cst_28 = arith.constant 0.000000e+00 : f32
    %34 = vector.broadcast %cst_28 : f32 to vector<64x92xf32>
    %35 = tpu.concatenate %25, %26, %27, %28, %29, %30, %31, %32, %33, %34 in 1 : vector<64x4xf32>, vector<64x4xf32>, vector<64x4xf32>, vector<64x4xf32>, vector<64x4xf32>, vector<64x4xf32>, vector<64x4xf32>, vector<64x4xf32>, vector<64x4xf32>, vector<64x92xf32> -> vector<64x128xf32>
    %c0_29 = arith.constant 0 : index
    %c0_30 = arith.constant 0 : index
    %36 = vector.load %arg2[%c0_29, %c0_30] : memref<128x8xf32, #tpu.memory_space<vmem>>, vector<128x8xf32>
    %cst_31 = arith.constant dense<0.000000e+00> : vector<64x8xf32>
    %37 = tpu.matmul %35, %36, %cst_31 {dimension_numbers = #tpu.dot_dimension_numbers<[1], [0], [0], [1], [0, 0, 1, 1], [], []>} : vector<64x128xf32>, vector<128x8xf32>, vector<64x8xf32> -> vector<64x8xf32>
    %cst_32 = arith.constant dense<0.000000e+00> : vector<8xf32>
    %38 = vector.multi_reduction <add>, %37, %cst_32 [0] : vector<64x8xf32> to vector<8xf32>
    %39 = vector.shape_cast %38 : vector<8xf32> to vector<1x8xf32>
    %40 = arith.mulf %37, %37 : vector<64x8xf32>
    %cst_33 = arith.constant dense<0.000000e+00> : vector<8xf32>
    %41 = vector.multi_reduction <add>, %40, %cst_33 [0] : vector<64x8xf32> to vector<8xf32>
    %42 = vector.shape_cast %41 : vector<8xf32> to vector<1x8xf32>
    %43 = tpu.concatenate %39, %42 in 0 : vector<1x8xf32>, vector<1x8xf32> -> vector<2x8xf32>
    %44 = vector.shape_cast %43 : vector<2x8xf32> to vector<1x2x8xf32>
    %c0_34 = arith.constant 0 : index
    %c0_35 = arith.constant 0 : index
    %c0_36 = arith.constant 0 : index
    %45 = vector.load %arg4[%c0_34, %c0_35, %c0_36] : memref<1x2x8xf32, #tpu.memory_space<vmem>>, vector<1x2x8xf32>
    tpu.vector_store %arg4[%c0_34, %c0_35, %c0_36], %44 {strides = array<i32>} : memref<1x2x8xf32, #tpu.memory_space<vmem>>, vector<1x2x8xf32>,
    %46 = vector.shape_cast %37 : vector<64x8xf32> to vector<1x8x8x8xf32>
    %c0_37 = arith.constant 0 : index
    %c0_38 = arith.constant 0 : index
    %c0_39 = arith.constant 0 : index
    %c0_40 = arith.constant 0 : index
    %47 = vector.load %arg3[%c0_37, %c0_38, %c0_39, %c0_40] : memref<1x8x8x8xf32, #tpu.memory_space<vmem>>, vector<1x8x8x8xf32>
    tpu.vector_store %arg3[%c0_37, %c0_38, %c0_39, %c0_40], %46 {strides = array<i32>} : memref<1x8x8x8xf32, #tpu.memory_space<vmem>>, vector<1x8x8x8xf32>,
    return
  }
  func.func @transform_0(%arg0: i32) -> (i32, i32, i32, i32, i32) {
    %c0_i32 = arith.constant 0 : i32
    %c0_i32_0 = arith.constant 0 : i32
    %c0_i32_1 = arith.constant 0 : i32
    %c0_i32_2 = arith.constant 0 : i32
    %c0_i32_3 = arith.constant 0 : i32
    return %arg0, %c0_i32, %c0_i32_0, %c0_i32_1, %c0_i32_2 : i32, i32, i32, i32, i32
  }
  func.func @transform_1(%arg0: i32) -> (i32, i32) {
    %c0_i32 = arith.constant 0 : i32
    %c0_i32_0 = arith.constant 0 : i32
    %c0_i32_1 = arith.constant 0 : i32
    return %c0_i32, %c0_i32_0 : i32, i32
  }
  func.func @transform_2(%arg0: i32) -> (i32, i32, i32, i32) {
    %c0_i32 = arith.constant 0 : i32
    %c0_i32_0 = arith.constant 0 : i32
    %c0_i32_1 = arith.constant 0 : i32
    %c0_i32_2 = arith.constant 0 : i32
    return %arg0, %c0_i32, %c0_i32_0, %c0_i32_1 : i32, i32, i32, i32
  }
  func.func @transform_3(%arg0: i32) -> (i32, i32, i32) {
    %c0_i32 = arith.constant 0 : i32
    %c0_i32_0 = arith.constant 0 : i32
    %c0_i32_1 = arith.constant 0 : i32
    return %arg0, %c0_i32, %c0_i32_0 : i32, i32, i32
  }
}

module attributes {stable_mosaic.version = 11 : i64} {
  func.func @bn_relu_kernel(%arg0: i32, %arg1: memref<1x8x8x8xf32, #tpu.memory_space<vmem>>, %arg2: memref<1x8xf32, #tpu.memory_space<vmem>>, %arg3: memref<1x8xf32, #tpu.memory_space<vmem>>, %arg4: memref<1x8x8x8xf32, #tpu.memory_space<vmem>>) attributes {dimension_semantics = [#tpu.dimension_semantics<parallel>], iteration_bounds = array<i64: 2>, scalar_prefetch = 0 : i64, scratch_operands = 0 : i64, tpu.core_type = #tpu.core_type<tc>, window_params = [{transform_indices = @transform_0, window_bounds = array<i64: 1, 8, 8, 8>}, {pipeline_mode = #tpu.pipeline_mode<synchronous>, transform_indices = @transform_1, window_bounds = array<i64: 1, 8>}, {pipeline_mode = #tpu.pipeline_mode<synchronous>, transform_indices = @transform_2, window_bounds = array<i64: 1, 8>}, {transform_indices = @transform_3, window_bounds = array<i64: 1, 8, 8, 8>}]} {
    %c0 = arith.constant 0 : index
    %c0_0 = arith.constant 0 : index
    %c0_1 = arith.constant 0 : index
    %c0_2 = arith.constant 0 : index
    %0 = vector.load %arg1[%c0, %c0_0, %c0_1, %c0_2] : memref<1x8x8x8xf32, #tpu.memory_space<vmem>>, vector<1x8x8x8xf32>
    %1 = vector.shape_cast %0 : vector<1x8x8x8xf32> to vector<64x8xf32>
    %c0_3 = arith.constant 0 : index
    %c0_4 = arith.constant 0 : index
    %2 = vector.load %arg2[%c0_3, %c0_4] : memref<1x8xf32, #tpu.memory_space<vmem>>, vector<1x8xf32>
    %3 = vector.broadcast %2 : vector<1x8xf32> to vector<64x8xf32>
    %4 = arith.mulf %1, %3 : vector<64x8xf32>
    %c0_5 = arith.constant 0 : index
    %c0_6 = arith.constant 0 : index
    %5 = vector.load %arg3[%c0_5, %c0_6] : memref<1x8xf32, #tpu.memory_space<vmem>>, vector<1x8xf32>
    %6 = vector.broadcast %5 : vector<1x8xf32> to vector<64x8xf32>
    %7 = arith.addf %4, %6 : vector<64x8xf32>
    %cst = arith.constant 0.000000e+00 : f32
    %8 = vector.broadcast %cst : f32 to vector<64x8xf32>
    %9 = arith.maximumf %7, %8 : vector<64x8xf32>
    %10 = vector.shape_cast %9 : vector<64x8xf32> to vector<1x8x8x8xf32>
    %c0_7 = arith.constant 0 : index
    %c0_8 = arith.constant 0 : index
    %c0_9 = arith.constant 0 : index
    %c0_10 = arith.constant 0 : index
    %11 = vector.load %arg4[%c0_7, %c0_8, %c0_9, %c0_10] : memref<1x8x8x8xf32, #tpu.memory_space<vmem>>, vector<1x8x8x8xf32>
    tpu.vector_store %arg4[%c0_7, %c0_8, %c0_9, %c0_10], %10 {strides = array<i32>} : memref<1x8x8x8xf32, #tpu.memory_space<vmem>>, vector<1x8x8x8xf32>,
    return
  }
  func.func @transform_0(%arg0: i32) -> (i32, i32, i32, i32) {
    %c0_i32 = arith.constant 0 : i32
    %c0_i32_0 = arith.constant 0 : i32
    %c0_i32_1 = arith.constant 0 : i32
    %c0_i32_2 = arith.constant 0 : i32
    return %arg0, %c0_i32, %c0_i32_0, %c0_i32_1 : i32, i32, i32, i32
  }
  func.func @transform_1(%arg0: i32) -> (i32, i32) {
    %c0_i32 = arith.constant 0 : i32
    %c0_i32_0 = arith.constant 0 : i32
    %c0_i32_1 = arith.constant 0 : i32
    return %c0_i32, %c0_i32_0 : i32, i32
  }
  func.func @transform_2(%arg0: i32) -> (i32, i32) {
    %c0_i32 = arith.constant 0 : i32
    %c0_i32_0 = arith.constant 0 : i32
    %c0_i32_1 = arith.constant 0 : i32
    return %c0_i32, %c0_i32_0 : i32, i32
  }
  func.func @transform_3(%arg0: i32) -> (i32, i32, i32, i32) {
    %c0_i32 = arith.constant 0 : i32
    %c0_i32_0 = arith.constant 0 : i32
    %c0_i32_1 = arith.constant 0 : i32
    %c0_i32_2 = arith.constant 0 : i32
    return %arg0, %c0_i32, %c0_i32_0, %c0_i32_1 : i32, i32, i32, i32
  }
}

module attributes {stable_mosaic.version = 11 : i64} {
  func.func @bn_conv_kernel(%arg0: i32, %arg1: memref<1x8x8x8xf32, #tpu.memory_space<vmem>>, %arg2: memref<1x8xf32, #tpu.memory_space<vmem>>, %arg3: memref<1x8xf32, #tpu.memory_space<vmem>>, %arg4: memref<128x8xf32, #tpu.memory_space<vmem>>, %arg5: memref<1x8x8x8xf32, #tpu.memory_space<vmem>>, %arg6: memref<1x2x8xf32, #tpu.memory_space<vmem>>, %arg7: memref<10x10x8xf32, #tpu.memory_space<vmem>>) attributes {dimension_semantics = [#tpu.dimension_semantics<parallel>], iteration_bounds = array<i64: 2>, scalar_prefetch = 0 : i64, scratch_operands = 1 : i64, tpu.core_type = #tpu.core_type<tc>, window_params = [{transform_indices = @transform_0, window_bounds = array<i64: 1, 8, 8, 8>}, {pipeline_mode = #tpu.pipeline_mode<synchronous>, transform_indices = @transform_1, window_bounds = array<i64: 1, 8>}, {pipeline_mode = #tpu.pipeline_mode<synchronous>, transform_indices = @transform_2, window_bounds = array<i64: 1, 8>}, {pipeline_mode = #tpu.pipeline_mode<synchronous>, transform_indices = @transform_3, window_bounds = array<i64: 128, 8>}, {transform_indices = @transform_4, window_bounds = array<i64: 1, 8, 8, 8>}, {transform_indices = @transform_5, window_bounds = array<i64: 1, 2, 8>}]} {
    %c0 = arith.constant 0 : index
    %c0_0 = arith.constant 0 : index
    %c0_1 = arith.constant 0 : index
    %c0_2 = arith.constant 0 : index
    %0 = vector.load %arg1[%c0, %c0_0, %c0_1, %c0_2] : memref<1x8x8x8xf32, #tpu.memory_space<vmem>>, vector<1x8x8x8xf32>
    %1 = vector.shape_cast %0 : vector<1x8x8x8xf32> to vector<64x8xf32>
    %c0_3 = arith.constant 0 : index
    %c0_4 = arith.constant 0 : index
    %2 = vector.load %arg2[%c0_3, %c0_4] : memref<1x8xf32, #tpu.memory_space<vmem>>, vector<1x8xf32>
    %3 = vector.broadcast %2 : vector<1x8xf32> to vector<64x8xf32>
    %4 = arith.mulf %1, %3 : vector<64x8xf32>
    %c0_5 = arith.constant 0 : index
    %c0_6 = arith.constant 0 : index
    %5 = vector.load %arg3[%c0_5, %c0_6] : memref<1x8xf32, #tpu.memory_space<vmem>>, vector<1x8xf32>
    %6 = vector.broadcast %5 : vector<1x8xf32> to vector<64x8xf32>
    %7 = arith.addf %4, %6 : vector<64x8xf32>
    %cst = arith.constant 0.000000e+00 : f32
    %8 = vector.broadcast %cst : f32 to vector<64x8xf32>
    %9 = arith.maximumf %7, %8 : vector<64x8xf32>
    %cst_7 = arith.constant 0.000000e+00 : f32
    %10 = vector.broadcast %cst_7 : f32 to vector<1x10x8xf32>
    %c0_8 = arith.constant 0 : index
    %c0_9 = arith.constant 0 : index
    %c0_10 = arith.constant 0 : index
    %11 = vector.load %arg7[%c0_8, %c0_9, %c0_10] : memref<10x10x8xf32, #tpu.memory_space<vmem>>, vector<1x10x8xf32>
    tpu.vector_store %arg7[%c0_8, %c0_9, %c0_10], %10 {strides = array<i32>} : memref<10x10x8xf32, #tpu.memory_space<vmem>>, vector<1x10x8xf32>,
    %cst_11 = arith.constant 0.000000e+00 : f32
    %12 = vector.broadcast %cst_11 : f32 to vector<1x10x8xf32>
    %c9 = arith.constant 9 : index
    %c0_12 = arith.constant 0 : index
    %c0_13 = arith.constant 0 : index
    %13 = vector.load %arg7[%c9, %c0_12, %c0_13] : memref<10x10x8xf32, #tpu.memory_space<vmem>>, vector<1x10x8xf32>
    tpu.vector_store %arg7[%c9, %c0_12, %c0_13], %12 {strides = array<i32>} : memref<10x10x8xf32, #tpu.memory_space<vmem>>, vector<1x10x8xf32>,
    %cst_14 = arith.constant 0.000000e+00 : f32
    %14 = vector.broadcast %cst_14 : f32 to vector<10x1x8xf32>
    %c0_15 = arith.constant 0 : index
    %c0_16 = arith.constant 0 : index
    %c0_17 = arith.constant 0 : index
    %15 = vector.load %arg7[%c0_15, %c0_16, %c0_17] : memref<10x10x8xf32, #tpu.memory_space<vmem>>, vector<10x1x8xf32>
    tpu.vector_store %arg7[%c0_15, %c0_16, %c0_17], %14 {strides = array<i32>} : memref<10x10x8xf32, #tpu.memory_space<vmem>>, vector<10x1x8xf32>,
    %cst_18 = arith.constant 0.000000e+00 : f32
    %16 = vector.broadcast %cst_18 : f32 to vector<10x1x8xf32>
    %c0_19 = arith.constant 0 : index
    %c9_20 = arith.constant 9 : index
    %c0_21 = arith.constant 0 : index
    %17 = vector.load %arg7[%c0_19, %c9_20, %c0_21] : memref<10x10x8xf32, #tpu.memory_space<vmem>>, vector<10x1x8xf32>
    tpu.vector_store %arg7[%c0_19, %c9_20, %c0_21], %16 {strides = array<i32>} : memref<10x10x8xf32, #tpu.memory_space<vmem>>, vector<10x1x8xf32>,
    %18 = vector.shape_cast %9 : vector<64x8xf32> to vector<8x8x8xf32>
    %c1 = arith.constant 1 : index
    %c1_22 = arith.constant 1 : index
    %c0_23 = arith.constant 0 : index
    %19 = vector.load %arg7[%c1, %c1_22, %c0_23] : memref<10x10x8xf32, #tpu.memory_space<vmem>>, vector<8x8x8xf32>
    tpu.vector_store %arg7[%c1, %c1_22, %c0_23], %18 {strides = array<i32>} : memref<10x10x8xf32, #tpu.memory_space<vmem>>, vector<8x8x8xf32>,
    %c0_24 = arith.constant 0 : index
    %c0_25 = arith.constant 0 : index
    %c0_26 = arith.constant 0 : index
    %20 = vector.load %arg7[%c0_24, %c0_25, %c0_26] : memref<10x10x8xf32, #tpu.memory_space<vmem>>, vector<10x8x8xf32>
    %21 = vector.shape_cast %20 : vector<10x8x8xf32> to vector<80x8xf32>
    %c0_27 = arith.constant 0 : index
    %c1_28 = arith.constant 1 : index
    %c0_29 = arith.constant 0 : index
    %22 = vector.load %arg7[%c0_27, %c1_28, %c0_29] : memref<10x10x8xf32, #tpu.memory_space<vmem>>, vector<10x8x8xf32>
    %23 = vector.shape_cast %22 : vector<10x8x8xf32> to vector<80x8xf32>
    %c0_30 = arith.constant 0 : index
    %c2 = arith.constant 2 : index
    %c0_31 = arith.constant 0 : index
    %24 = vector.load %arg7[%c0_30, %c2, %c0_31] : memref<10x10x8xf32, #tpu.memory_space<vmem>>, vector<10x8x8xf32>
    %25 = vector.shape_cast %24 : vector<10x8x8xf32> to vector<80x8xf32>
    %26 = vector.extract_strided_slice %21 {offsets = [0, 0], sizes = [64, 8], strides = [1, 1]} : vector<80x8xf32> to vector<64x8xf32>
    %27 = vector.extract_strided_slice %23 {offsets = [0, 0], sizes = [64, 8], strides = [1, 1]} : vector<80x8xf32> to vector<64x8xf32>
    %28 = vector.extract_strided_slice %25 {offsets = [0, 0], sizes = [64, 8], strides = [1, 1]} : vector<80x8xf32> to vector<64x8xf32>
    %29 = vector.extract_strided_slice %21 {offsets = [8, 0], sizes = [64, 8], strides = [1, 1]} : vector<80x8xf32> to vector<64x8xf32>
    %30 = vector.extract_strided_slice %23 {offsets = [8, 0], sizes = [64, 8], strides = [1, 1]} : vector<80x8xf32> to vector<64x8xf32>
    %31 = vector.extract_strided_slice %25 {offsets = [8, 0], sizes = [64, 8], strides = [1, 1]} : vector<80x8xf32> to vector<64x8xf32>
    %32 = vector.extract_strided_slice %21 {offsets = [16, 0], sizes = [64, 8], strides = [1, 1]} : vector<80x8xf32> to vector<64x8xf32>
    %33 = vector.extract_strided_slice %23 {offsets = [16, 0], sizes = [64, 8], strides = [1, 1]} : vector<80x8xf32> to vector<64x8xf32>
    %34 = vector.extract_strided_slice %25 {offsets = [16, 0], sizes = [64, 8], strides = [1, 1]} : vector<80x8xf32> to vector<64x8xf32>
    %cst_32 = arith.constant 0.000000e+00 : f32
    %35 = vector.broadcast %cst_32 : f32 to vector<64x56xf32>
    %36 = tpu.concatenate %26, %27, %28, %29, %30, %31, %32, %33, %34, %35 in 1 : vector<64x8xf32>, vector<64x8xf32>, vector<64x8xf32>, vector<64x8xf32>, vector<64x8xf32>, vector<64x8xf32>, vector<64x8xf32>, vector<64x8xf32>, vector<64x8xf32>, vector<64x56xf32> -> vector<64x128xf32>
    %c0_33 = arith.constant 0 : index
    %c0_34 = arith.constant 0 : index
    %37 = vector.load %arg4[%c0_33, %c0_34] : memref<128x8xf32, #tpu.memory_space<vmem>>, vector<128x8xf32>
    %cst_35 = arith.constant dense<0.000000e+00> : vector<64x8xf32>
    %38 = tpu.matmul %36, %37, %cst_35 {dimension_numbers = #tpu.dot_dimension_numbers<[1], [0], [0], [1], [0, 0, 1, 1], [], []>} : vector<64x128xf32>, vector<128x8xf32>, vector<64x8xf32> -> vector<64x8xf32>
    %cst_36 = arith.constant dense<0.000000e+00> : vector<8xf32>
    %39 = vector.multi_reduction <add>, %38, %cst_36 [0] : vector<64x8xf32> to vector<8xf32>
    %40 = vector.shape_cast %39 : vector<8xf32> to vector<1x8xf32>
    %41 = arith.mulf %38, %38 : vector<64x8xf32>
    %cst_37 = arith.constant dense<0.000000e+00> : vector<8xf32>
    %42 = vector.multi_reduction <add>, %41, %cst_37 [0] : vector<64x8xf32> to vector<8xf32>
    %43 = vector.shape_cast %42 : vector<8xf32> to vector<1x8xf32>
    %44 = tpu.concatenate %40, %43 in 0 : vector<1x8xf32>, vector<1x8xf32> -> vector<2x8xf32>
    %45 = vector.shape_cast %44 : vector<2x8xf32> to vector<1x2x8xf32>
    %c0_38 = arith.constant 0 : index
    %c0_39 = arith.constant 0 : index
    %c0_40 = arith.constant 0 : index
    %46 = vector.load %arg6[%c0_38, %c0_39, %c0_40] : memref<1x2x8xf32, #tpu.memory_space<vmem>>, vector<1x2x8xf32>
    tpu.vector_store %arg6[%c0_38, %c0_39, %c0_40], %45 {strides = array<i32>} : memref<1x2x8xf32, #tpu.memory_space<vmem>>, vector<1x2x8xf32>,
    %47 = vector.shape_cast %38 : vector<64x8xf32> to vector<1x8x8x8xf32>
    %c0_41 = arith.constant 0 : index
    %c0_42 = arith.constant 0 : index
    %c0_43 = arith.constant 0 : index
    %c0_44 = arith.constant 0 : index
    %48 = vector.load %arg5[%c0_41, %c0_42, %c0_43, %c0_44] : memref<1x8x8x8xf32, #tpu.memory_space<vmem>>, vector<1x8x8x8xf32>
    tpu.vector_store %arg5[%c0_41, %c0_42, %c0_43, %c0_44], %47 {strides = array<i32>} : memref<1x8x8x8xf32, #tpu.memory_space<vmem>>, vector<1x8x8x8xf32>,
    return
  }
  func.func @transform_0(%arg0: i32) -> (i32, i32, i32, i32) {
    %c0_i32 = arith.constant 0 : i32
    %c0_i32_0 = arith.constant 0 : i32
    %c0_i32_1 = arith.constant 0 : i32
    %c0_i32_2 = arith.constant 0 : i32
    return %arg0, %c0_i32, %c0_i32_0, %c0_i32_1 : i32, i32, i32, i32
  }
  func.func @transform_1(%arg0: i32) -> (i32, i32) {
    %c0_i32 = arith.constant 0 : i32
    %c0_i32_0 = arith.constant 0 : i32
    %c0_i32_1 = arith.constant 0 : i32
    return %c0_i32, %c0_i32_0 : i32, i32
  }
  func.func @transform_2(%arg0: i32) -> (i32, i32) {
    %c0_i32 = arith.constant 0 : i32
    %c0_i32_0 = arith.constant 0 : i32
    %c0_i32_1 = arith.constant 0 : i32
    return %c0_i32, %c0_i32_0 : i32, i32
  }
  func.func @transform_3(%arg0: i32) -> (i32, i32) {
    %c0_i32 = arith.constant 0 : i32
    %c0_i32_0 = arith.constant 0 : i32
    %c0_i32_1 = arith.constant 0 : i32
    return %c0_i32, %c0_i32_0 : i32, i32
  }
  func.func @transform_4(%arg0: i32) -> (i32, i32, i32, i32) {
    %c0_i32 = arith.constant 0 : i32
    %c0_i32_0 = arith.constant 0 : i32
    %c0_i32_1 = arith.constant 0 : i32
    %c0_i32_2 = arith.constant 0 : i32
    return %arg0, %c0_i32, %c0_i32_0, %c0_i32_1 : i32, i32, i32, i32
  }
  func.func @transform_5(%arg0: i32) -> (i32, i32, i32) {
    %c0_i32 = arith.constant 0 : i32
    %c0_i32_0 = arith.constant 0 : i32
    %c0_i32_1 = arith.constant 0 : i32
    return %arg0, %c0_i32, %c0_i32_0 : i32, i32, i32
  }
}

</mosaic_0001>

<bundles_post_ra>
// kernel: down_forward.5
= control target key start
LH: loop header
LB: loop body
LE: loop exit
PB: predicated region body
PF: predicated region fallthrough
CT: control target
= control target key end

     0   :  { %s326_s12 = smov 0   ;;  %s357_s0 = inlined_call_operand.vmem [shape: f32[2,8,8,8], index: 0, kind: input, shape index: {}]   ;;  %s358_s1 = inlined_call_operand.vmem [shape: f32[1,8], index: 1, kind: input, shape index: {}]   ;;  %s359_s2 = inlined_call_operand.vmem [shape: f32[1,8], index: 2, kind: input, shape index: {}]   ;;  %s360_s3 = inlined_call_operand.vmem [shape: f32[2,8,8,8], index: 3, kind: output, shape index: {}]  }
   0x1 LB: > { %s275_s13 = sadd.s32 4294967295, %s304_s12   ;;  %p279_p0 = scmp.ge.s32.totalorder %s304_s12, 1  ;;  %s304_s12 = sphi %s326_s12, %s13_s12  }
   0x2   : > { %p137_p1 = scmp.lt.s32.totalorder %s304_s12, 3 }
   0x4   : > { %p138_p2 = pnand %p279_p0, %p137_p1 }
   0x5   : > { %p161_p3 = scmp.lt.s32.totalorder (!%p138_p2), %s275_s13, 1 }
   0x6   : > { %141 = sbr.rel (%p138_p2) target bundleno = 29 (0x1d), region = 32 }
   0xb   : > { %s362_s13 = smov (!%p161_p3, %s275_s13), 1  ;;  %v296_v0 = vld [vmem:[%s358_s1] ss:$0 sm:$0xff]  ;;  %vm211_vm0 = vcmask 64512  }
   0xc   : > { %s286_s16 = sshll.u32 %s362_s13, 6  ;;  %v297_v1 = vld [vmem:[%s359_s2] ss:$0 sm:$0xff] }
   0xd   : > { %s165_s19 = scalar_lea.vmem %s357_s0, %s286_s16  ;;  %s170_s24 = scalar_lea.vmem %s360_s3, %s286_s16 }
   0xe   : > { %v171_v2 = vld [vmem:[%s165_s19] sm:$0xff]  ;;  %v172_v3 = vld [vmem:[%s165_s19 + $0x8] sm:$0xff]  ;;  %v173_v4 = vld [vmem:[%s165_s19 + $0x10] sm:$0xff] }
   0xf   : > { %v183_v5 = vmul.f32 %v296_v0, %v171_v2  ;;  %v184_v6 = vmul.f32 %v296_v0, %v172_v3  ;;  %v185_v7 = vmul.f32 %v296_v0, %v173_v4  ;;  %v174_v8 = vld [vmem:[%s165_s19 + $0x18] sm:$0xff]  ;;  %v175_v9 = vld [vmem:[%s165_s19 + $0x20] sm:$0xff]  ;;  %v176_v10 = vld [vmem:[%s165_s19 + $0x28] sm:$0xff] }
  0x10   : > { %v186_v11 = vmul.f32 %v296_v0, %v174_v8  ;;  %v187_v12 = vmul.f32 %v296_v0, %v175_v9  ;;  %v188_v13 = vmul.f32 %v296_v0, %v176_v10  ;;  %v177_v14 = vld [vmem:[%s165_s19 + $0x30] sm:$0xff]  ;;  %v178_v15 = vld [vmem:[%s165_s19 + $0x38] sm:$0xff] }
  0x11   : > { %v195_v16 = vadd.f32 %v297_v1, %v183_v5  ;;  %v196_v17 = vadd.f32 %v297_v1, %v184_v6  ;;  %v197_v18 = vadd.f32 %v297_v1, %v185_v7  ;;  %v189_v19 = vmul.f32 %v296_v0, %v177_v14 }
  0x12   : > { %v198_v20 = vadd.f32 %v297_v1, %v186_v11  ;;  %v199_v21 = vadd.f32 %v297_v1, %v187_v12  ;;  %v200_v22 = vadd.f32 %v297_v1, %v188_v13  ;;  %v190_v23 = vmul.f32 %v296_v0, %v178_v15 }
  0x13   : > { %v203_v24 = vmax.f32 %v195_v16, 0.0  ;;  %v204_v25 = vmax.f32 %v196_v17, 0.0  ;;  %v205_v26 = vmax.f32 %v197_v18, 0.0  ;;  %v201_v27 = vadd.f32 %v297_v1, %v189_v19 }
  0x14   : > { %v206_v28 = vmax.f32 %v198_v20, 0.0  ;;  %v202_v29 = vadd.f32 %v297_v1, %v190_v23  ;;  %v207_v30 = vmax.f32 %v199_v21, 0.0  ;;  %v208_v31 = vmax.f32 %v200_v22, 0.0 }
  0x15   : > { %212 = vst.msk [vmem:[%s170_s24] sm:$0xff] %vm211_vm0, %v203_v24  ;;  %v209_v32 = vmax.f32 %v201_v27, 0.0 }
  0x16   : > { %213 = vst.msk [vmem:[%s170_s24 + $0x8] sm:$0xff] %vm211_vm0, %v204_v25  ;;  %v210_v33 = vmax.f32 %v202_v29, 0.0 }
  0x17   : > { %214 = vst.msk [vmem:[%s170_s24 + $0x10] sm:$0xff] %vm211_vm0, %v205_v26 }
  0x18   : > { %215 = vst.msk [vmem:[%s170_s24 + $0x18] sm:$0xff] %vm211_vm0, %v206_v28 }
  0x19   : > { %216 = vst.msk [vmem:[%s170_s24 + $0x20] sm:$0xff] %vm211_vm0, %v207_v30 }
  0x1a   : > { %217 = vst.msk [vmem:[%s170_s24 + $0x28] sm:$0xff] %vm211_vm0, %v208_v31 }
  0x1b   : > { %218 = vst.msk [vmem:[%s170_s24 + $0x30] sm:$0xff] %vm211_vm0, %v209_v32 }
  0x1c   : > { %219 = vst.msk [vmem:[%s170_s24 + $0x38] sm:$0xff] %vm211_vm0, %v210_v33 }
  0x1d PF: > { %s13_s12 = sadd.s32 1, %s304_s12  }
  0x1e   : > { %p10_p4 = scmp.ge.s32.totalorder %s13_s12, 4  }
  0x20   :  { %12 = sbr.rel (!%p10_p4) target bundleno = 1 (0x1), region = 62 }

// kernel: down_forward.3
= control target key start
LH: loop header
LB: loop body
LE: loop exit
PB: predicated region body
PF: predicated region fallthrough
CT: control target
= control target key end

     0   :  { %s945_s12 = smov 0   ;;  %s1385_s0 = inlined_call_operand.vmem [shape: f32[2,8,2,8,8], index: 0, kind: input, shape index: {}]   ;;  %s1386_s1 = inlined_call_operand.vmem [shape: f32[128,8], index: 1, kind: input, shape index: {}]   ;;  %s1387_s2 = inlined_call_operand.vmem [shape: f32[2,8,8,8], index: 2, kind: output, shape index: {0}]   ;;  %s1388_s3 = inlined_call_operand.vmem [shape: f32[2,2,8], index: 3, kind: output, shape index: {1}]  }
   0x1 LB: > { %s819_s13 = sadd.s32 4294967295, %s913_s12   ;;  %p823_p0 = scmp.ge.s32.totalorder %s913_s12, 1  ;;  %s913_s12 = sphi %s945_s12, %s14_s12  }
   0x2   : > { %p140_p1 = scmp.lt.s32.totalorder %s913_s12, 3 }
   0x4   : > { %p141_p2 = pnand %p823_p0, %p140_p1 }
   0x5   : > { %p168_p3 = scmp.lt.s32.totalorder (!%p141_p2), %s819_s13, 1  ;;  %s916_s18 = smov (!%p141_p2), 124  }
   0x6   : > { %144 = sbr.rel (%p141_p2) target bundleno = 579 (0x243), region = 28  ;;  %s917_s19 = smov (!%p141_p2), 8  }
   0x7   : > { %s918_s20 = smov (!%p141_p2), 4   ;;  %s919_s21 = smov (!%p141_p2), 12  }
   0x8   : > { %s920_s22 = smov (!%p141_p2), 16   ;;  %s921_s23 = smov (!%p141_p2), 20  }
   0x9   : > { %s922_s24 = smov (!%p141_p2), 28   ;;  %s923_s25 = smov (!%p141_p2), 24  }
   0xa   : > { %s924_s26 = smov (!%p141_p2), 32  }
   0xb   : > { %vm246_vm0 = vcmask 31744   ;;  %vm248_vm1 = vcmask 25600   ;;  %vm253_vm2 = vcmask 24576   ;;  %v915_v0 = vmov 0.0   ;;  %s1390_s13 = smov (!%p168_p3, %s819_s13), 1 }
   0xc   : > { %247 = vst.msk [vmem:[#allocation2] sm:$0xff] %vm246_vm0, %v915_v0  ;;  %s839_s14 = sshll.u32 %s1390_s13, 7  ;;  %vm542_vm3 = vcmask 64512   ;;  %vm551_vm4 = vcmask 97280   ;;  %vm560_vm5 = vcmask 130048   ;;  %vm569_vm6 = vcmask 162816  }
   0xd   : > { %249 = vst.msk [vmem:[#allocation2 + $0x8] sm:$0x3] %vm248_vm1, %v915_v0  ;;  %s962_s17 = scalar_lea.vmem %s1385_s0, %s839_s14  ;;  %vm578_vm7 = vcmask 195584   ;;  %vm587_vm8 = vcmask 228352   ;;  %vm596_vm9 = vcmask 261120   ;;  %vm605_vm10 = vcmask 293888  }
   0xe   : > { %264 = vst.msk [vmem:[#allocation2 + $0x9] sm:$0x1] %vm253_vm2, %v915_v0  ;;  %v182_v1 = vld [vmem:[%s962_s17] sm:$0xff]  ;;  %v183_v2 = vld [vmem:[%s962_s17 + $0x8] sm:$0xff]  ;;  %v184_v3 = vld [vmem:[%s962_s17 + $0x10] sm:$0xff]  ;;  %vm721_vm11 = vcmask 1040384  }
   0xf   : > { %251 = vst.msk [vmem:[#allocation2 + $0x90] sm:$0xff] %vm246_vm0, %v915_v0  ;;  %v968_v4 = vmax.f32 %v182_v1, %v183_v2  ;;  %v185_v5 = vld [vmem:[%s962_s17 + $0x18] sm:$0xff]  ;;  %v186_v7 = vld [vmem:[%s962_s17 + $0x20] sm:$0xff]  ;;  %v187_v8 = vld [vmem:[%s962_s17 + $0x28] sm:$0xff]  ;;  %vm723_vm12 = vcmask 58368  }
  0x10   : > { %252 = vst.msk [vmem:[#allocation2 + $0x98] sm:$0x3] %vm248_vm1, %v915_v0  ;;  %v972_v6 = vmax.f32 %v184_v3, %v185_v5  ;;  %v188_v9 = vld [vmem:[%s962_s17 + $0x30] sm:$0xff]  ;;  %v189_v10 = vld [vmem:[%s962_s17 + $0x38] sm:$0xff]  ;;  %v200_v11 = vmax.f32 %v186_v7, %v187_v8  ;;  %v190_v12 = vld [vmem:[%s962_s17 + $0x40] sm:$0xff] }
  0x11   : > { %254 = vst.msk [vmem:[#allocation2] sm:$0x1] %vm253_vm2, %v915_v0  ;;  %214 = vrot.lane.b32.xlu0 %v968_v4, %s916_s18  ;;  %v191_v13 = vld [vmem:[%s962_s17 + $0x48] sm:$0xff]  ;;  %v201_v14 = vmax.f32 %v188_v9, %v189_v10  ;;  %v192_v15 = vld [vmem:[%s962_s17 + $0x50] sm:$0xff]  ;;  %v193_v16 = vld [vmem:[%s962_s17 + $0x58] sm:$0xff] }
  0x12   : > { %255 = vst.msk [vmem:[#allocation2 + $0x10] sm:$0x1] %vm253_vm2, %v915_v0  ;;  %216 = vrot.lane.b32.xlu1 %v972_v6, %s916_s18  ;;  %218 = vrot.lane.b32.xlu2 %v200_v11, %s916_s18  ;;  %v202_v17 = vmax.f32 %v190_v12, %v191_v13  ;;  %v203_v18 = vmax.f32 %v192_v15, %v193_v16  ;;  %v194_v19 = vld [vmem:[%s962_s17 + $0x60] sm:$0xff]  ;;  %v195_v20 = vld [vmem:[%s962_s17 + $0x68] sm:$0xff] }
  0x13   : > { %256 = vst.msk [vmem:[#allocation2 + $0x20] sm:$0x1] %vm253_vm2, %v915_v0  ;;  %v196_v21 = vld [vmem:[%s962_s17 + $0x70] sm:$0xff]  ;;  %v197_v22 = vld [vmem:[%s962_s17 + $0x78] sm:$0xff]  ;;  %v204_v23 = vmax.f32 %v194_v19, %v195_v20  ;;  %v627_v7 = vld [vmem:[%s1386_s1 + $0x68] sm:$0xff] }
  0x14   : > { %257 = vst.msk [vmem:[#allocation2 + $0x30] sm:$0x1] %vm253_vm2, %v915_v0  ;;  %v1008_v24 = vmax.f32 %v196_v21, %v197_v22  ;;  %v293_v26 = vld [vmem:[#allocation2 + $0x1] sm:$0xff]  ;;  %v629_v5 = vld [vmem:[%s1386_s1 + $0x78] sm:$0xff]  ;;  %v624_v13 = vld [vmem:[%s1386_s1 + $0x50] sm:$0xff] }
  0x15   : > { %258 = vst.msk [vmem:[#allocation2 + $0x40] sm:$0x1] %vm253_vm2, %v915_v0  ;;  %v303_v25 = vld [vmem:[#allocation2 + $0x2] sm:$0xff]  ;;  %630 = vmatpush.msra.mxu0 %v629_v5  ;;  %842 = vmatpush.msra.mxu2 %v629_v5  ;;  %v625_v12 = vld [vmem:[%s1386_s1 + $0x58] sm:$0xff]  ;;  %v620_v20 = vld [vmem:[%s1386_s1 + $0x30] sm:$0xff] }
  0x16   : > { %259 = vst.msk [vmem:[#allocation2 + $0x50] sm:$0x1] %vm253_vm2, %v915_v0  ;;  %841 = vmatpush.msra.mxu1 %v629_v5  ;;  %843 = vmatpush.msra.mxu3 %v629_v5  ;;  %v623_v15 = vld [vmem:[%s1386_s1 + $0x48] sm:$0xff]  ;;  %v621_v19 = vld [vmem:[%s1386_s1 + $0x38] sm:$0xff] }
  0x17   : > { %260 = vst.msk [vmem:[#allocation2 + $0x60] sm:$0x1] %vm253_vm2, %v915_v0  ;;  %v619_v21 = vld [vmem:[%s1386_s1 + $0x28] sm:$0xff] }
  0x18   : > { %261 = vst.msk [vmem:[#allocation2 + $0x70] sm:$0x1] %vm253_vm2, %v915_v0 }
  0x19   : > { %262 = vst.msk [vmem:[#allocation2 + $0x80] sm:$0x1] %vm253_vm2, %v915_v0  ;;  %220 = vrot.lane.b32.xlu0 %v201_v14, %s916_s18 }
  0x1a   : > { %265 = vst.msk [vmem:[#allocation2 + $0x19] sm:$0x1] %vm253_vm2, %v915_v0  ;;  %222 = vrot.lane.b32.xlu1 %v202_v17, %s916_s18  ;;  %224 = vrot.lane.b32.xlu2 %v203_v18, %s916_s18 }
  0x1b   : > { %266 = vst.msk [vmem:[#allocation2 + $0x29] sm:$0x1] %vm253_vm2, %v915_v0 }
  0x1c   : > { %267 = vst.msk [vmem:[#allocation2 + $0x39] sm:$0x1] %vm253_vm2, %v915_v0 }
  0x1d   : > { %268 = vst.msk [vmem:[#allocation2 + $0x49] sm:$0x1] %vm253_vm2, %v915_v0 }
  0x1e   : > { %269 = vst.msk [vmem:[#allocation2 + $0x59] sm:$0x1] %vm253_vm2, %v915_v0 }
  0x1f   : > { %270 = vst.msk [vmem:[#allocation2 + $0x69] sm:$0x1] %vm253_vm2, %v915_v0 }
  0x20   : > { %271 = vst.msk [vmem:[#allocation2 + $0x79] sm:$0x1] %vm253_vm2, %v915_v0 }
  0x21   : > { %272 = vst.msk [vmem:[#allocation2 + $0x89] sm:$0x1] %vm253_vm2, %v915_v0  ;;  %226 = vrot.lane.b32.xlu0 %v204_v23, %s916_s18 }
  0x22   : > { %263 = vst.msk [vmem:[#allocation2 + $0x90] sm:$0x1] %vm253_vm2, %v915_v0  ;;  %228 = vrot.lane.b32.xlu1 %v1008_v24, %s916_s18  ;;  %321 = vrot.lane.b32.xlu2 %v293_v26, %s918_s20  ;;  %v617_v26 = vld [vmem:[%s1386_s1 + $0x18] sm:$0xff] }
  0x23   : > { %273 = vst.msk [vmem:[#allocation2 + $0x99] sm:$0x1] %vm253_vm2, %v915_v0 }
  0x29   : > { %353 = vrot.lane.b32.xlu0 %v303_v25, %s917_s19  ;;  %v618_v25 = vld [vmem:[%s1386_s1 + $0x20] sm:$0xff] }
  0x6c   : > { %v219_v27 = vpop.permute.xlu2 %218 }
  0x6d   : > { %v240_v28 = vmax.f32 %v200_v11, %v219_v27  ;;  %v626_v11 = vld [vmem:[%s1386_s1 + $0x60] sm:$0xff]  ;;  %v616_v27 = vld [vmem:[%s1386_s1 + $0x10] sm:$0xff] }
  0x6f   : > { %277 = vst.msk [vmem:[#allocation2 + $0x31] sm:$0xff] %vm246_vm0, %v240_v28  ;;  %v615_v28 = vld [vmem:[%s1386_s1 + $0x8] sm:$0xff] }
  0x74   : > { %v225_v29 = vpop.permute.xlu2 %224 }
  0x75   : > { %v243_v30 = vmax.f32 %v203_v18, %v225_v29  ;;  %v622_v18 = vld [vmem:[%s1386_s1 + $0x40] sm:$0xff] }
  0x76   : > { %v1058_v51 = vld [vmem:[#allocation2 + $0x30] sm:$0xff] }
  0x77   : > { %280 = vst.msk [vmem:[#allocation2 + $0x61] sm:$0xff] %vm246_vm0, %v243_v30  ;;  %v1082_v59 = vld [vmem:[#allocation2 + $0x31] sm:$0xff] }
  0x78   : > { %v1088_v60 = vld [vmem:[#allocation2 + $0x32] sm:$0xff] }
  0x7c   : > { %v1115_v0 = vpop.permute.xlu2 %321 }
  0x7e   : > { %v1049_v48 = vld [vmem:[#allocation2 + $0x61] sm:$0xff] }
  0x7f   : > { %v1064_v53 = vld [vmem:[#allocation2 + $0x60] sm:$0xff] }
  0x80   : > { %v1066_v54 = vld [vmem:[#allocation2 + $0x62] sm:$0xff] }
  0x83   : > { %v215_v31 = vpop.permute.xlu0 %214 }
  0x84   : > { %v238_v32 = vmax.f32 %v968_v4, %v215_v31  ;;  %v217_v33 = vpop.permute.xlu1 %216 }
  0x85   : > { %v239_v34 = vmax.f32 %v972_v6, %v217_v33  ;;  %v628_v6 = vld [vmem:[%s1386_s1 + $0x70] sm:$0xff] }
  0x86   : > { %275 = vst.msk [vmem:[#allocation2 + $0x11] sm:$0xff] %vm246_vm0, %v238_v32  ;;  %631 = vmatpush.msra.mxu0 %v628_v6  ;;  %845 = vmatpush.msra.mxu2 %v628_v6  ;;  %v614_v32 = vld [vmem:[%s1386_s1] sm:$0xff] }
  0x87   : > { %276 = vst.msk [vmem:[#allocation2 + $0x21] sm:$0xff] %vm246_vm0, %v239_v34  ;;  %844 = vmatpush.msra.mxu1 %v628_v6  ;;  %846 = vmatpush.msra.mxu3 %v628_v6 }
  0x88   : > { %632 = vmatpush.msra.mxu0 %v627_v7  ;;  %848 = vmatpush.msra.mxu2 %v627_v7 }
  0x89   : > { %847 = vmatpush.msra.mxu1 %v627_v7  ;;  %849 = vmatpush.msra.mxu3 %v627_v7 }
  0x8a   : > { %633 = vmatpush.msra.mxu0 %v626_v11  ;;  %851 = vmatpush.msra.mxu2 %v626_v11 }
  0x8b   : > { %v221_v35 = vpop.permute.xlu0 %220  ;;  %850 = vmatpush.msra.mxu1 %v626_v11  ;;  %852 = vmatpush.msra.mxu3 %v626_v11 }
  0x8c   : > { %v241_v36 = vmax.f32 %v201_v14, %v221_v35  ;;  %v223_v37 = vpop.permute.xlu1 %222  ;;  %634 = vmatpush.msra.mxu0 %v625_v12  ;;  %854 = vmatpush.msra.mxu2 %v625_v12 }
  0x8d   : > { %v1024_v38 = vld [vmem:[#allocation2 + $0x10] sm:$0xff]  ;;  %v242_v39 = vmax.f32 %v202_v17, %v223_v37  ;;  %853 = vmatpush.msra.mxu1 %v625_v12  ;;  %855 = vmatpush.msra.mxu3 %v625_v12 }
  0x8e   : > { %278 = vst.msk [vmem:[#allocation2 + $0x41] sm:$0xff] %vm246_vm0, %v241_v36  ;;  %385 = vrot.lane.b32.xlu2 %v1024_v38, %s919_s21  ;;  %v295_v40 = vld [vmem:[#allocation2 + $0x21] sm:$0xff]  ;;  %v294_v47 = vld [vmem:[#allocation2 + $0x11] sm:$0xff]  ;;  %635 = vmatpush.msra.mxu0 %v624_v13 }
  0x8f   : > { %279 = vst.msk [vmem:[#allocation2 + $0x51] sm:$0xff] %vm246_vm0, %v242_v39  ;;  %v1040_v45 = vld [vmem:[#allocation2 + $0x22] sm:$0xff]  ;;  %v304_v50 = vld [vmem:[#allocation2 + $0x12] sm:$0xff]  ;;  %857 = vmatpush.msra.mxu2 %v624_v13  ;;  %856 = vmatpush.msra.mxu1 %v624_v13 }
  0x90   : > { %v285_v52 = vld [vmem:[#allocation2 + $0x20] sm:$0xff]  ;;  %636 = vmatpush.msra.mxu0 %v623_v15  ;;  %858 = vmatpush.msra.mxu3 %v624_v13 }
  0x91   : > { %860 = vmatpush.msra.mxu2 %v623_v15  ;;  %859 = vmatpush.msra.mxu1 %v623_v15  ;;  %v283_v39 = vld [vmem:[#allocation2] sm:$0xff] }
  0x92   : > { %637 = vmatpush.msra.mxu0 %v622_v18  ;;  %861 = vmatpush.msra.mxu3 %v623_v15 }
  0x93   : > { %v227_v41 = vpop.permute.xlu0 %226  ;;  %863 = vmatpush.msra.mxu2 %v622_v18  ;;  %862 = vmatpush.msra.mxu1 %v622_v18 }
  0x94   : > { %v244_v42 = vmax.f32 %v204_v23, %v227_v41  ;;  %v229_v56 = vpop.permute.xlu1 %228  ;;  %638 = vmatpush.msra.mxu0 %v621_v19  ;;  %864 = vmatpush.msra.mxu3 %v622_v18  ;;  %v292_v41 = vld [vmem:[#allocation2 + $0x90] sm:$0xff] }
  0x95   : > { %v1030_v43 = vld [vmem:[#allocation2 + $0x42] sm:$0xff]  ;;  %v245_v57 = vmax.f32 %v1008_v24, %v229_v56  ;;  %866 = vmatpush.msra.mxu2 %v621_v19  ;;  %865 = vmatpush.msra.mxu1 %v621_v19 }
  0x96   : > { %v1032_v44 = vld [vmem:[#allocation2 + $0x41] sm:$0xff]  ;;  %325 = vrot.lane.b32.xlu2 %v295_v40, %s918_s20  ;;  %361 = vrot.lane.b32.xlu0 %v1030_v43, %s917_s19  ;;  %281 = vst.msk [vmem:[#allocation2 + $0x71] sm:$0xff] %vm246_vm0, %v244_v42  ;;  %v1042_v46 = vld [vmem:[#allocation2 + $0x50] sm:$0xff]  ;;  %v534_v42 = vsel %vm246_vm0, %v283_v39, %v1115_v0 }
  0x97   : > { %329 = vrot.lane.b32.xlu1 %v1032_v44, %s918_s20  ;;  %v1051_v49 = vld [vmem:[#allocation2 + $0x51] sm:$0xff]  ;;  %282 = vst.msk [vmem:[#allocation2 + $0x81] sm:$0xff] %vm246_vm0, %v245_v57  ;;  %v1104_v63 = vld [vmem:[#allocation2 + $0x40] sm:$0xff]  ;;  %639 = vmatpush.msra.mxu0 %v620_v20 }
  0x98   : > { %v1072_v55 = vld [vmem:[#allocation2 + $0x52] sm:$0xff]  ;;  %869 = vmatpush.msra.mxu2 %v620_v20  ;;  %868 = vmatpush.msra.mxu1 %v620_v20 }
  0x99   : > { %640 = vmatpush.msra.mxu0 %v619_v21  ;;  %867 = vmatpush.msra.mxu3 %v621_v19  ;;  %v312_v57 = vld [vmem:[#allocation2 + $0x92] sm:$0xff] }
  0x9a   : > { %872 = vmatpush.msra.mxu2 %v619_v21  ;;  %871 = vmatpush.msra.mxu1 %v619_v21 }
  0x9b   : > { %v1175_v16 = vpop.permute.xlu0 %353  ;;  %641 = vmatpush.msra.mxu0 %v618_v25  ;;  %870 = vmatpush.msra.mxu3 %v620_v20 }
  0x9c   : > { %875 = vmatpush.msra.mxu2 %v618_v25  ;;  %874 = vmatpush.msra.mxu1 %v618_v25 }
  0x9d   : > { %v1078_v58 = vld [vmem:[#allocation2 + $0x70] sm:$0xff]  ;;  %642 = vmatpush.msra.mxu0 %v617_v26  ;;  %873 = vmatpush.msra.mxu3 %v619_v21 }
  0x9e   : > { %357 = vrot.lane.b32.xlu2 %v1040_v45, %s917_s19  ;;  %393 = vrot.lane.b32.xlu0 %v1042_v46, %s919_s21  ;;  %v1094_v61 = vld [vmem:[#allocation2 + $0x71] sm:$0xff]  ;;  %v1118_v1 = vld [vmem:[#allocation2 + $0x80] sm:$0xff] }
  0x9f   : > { %410 = vrot.lane.b32.xlu1 %v294_v47, %s920_s22  ;;  %v1102_v62 = vld [vmem:[#allocation2 + $0x72] sm:$0xff]  ;;  %v1128_v3 = vld [vmem:[#allocation2 + $0x81] sm:$0xff]  ;;  %643 = vmatpush.msra.mxu0 %v616_v27 }
  0xa0   : > { %v1164_v14 = vld [vmem:[#allocation2 + $0x82] sm:$0xff]  ;;  %878 = vmatpush.msra.mxu2 %v617_v26  ;;  %877 = vmatpush.msra.mxu1 %v617_v26 }
  0xa1   : > { %644 = vmatpush.msra.mxu0 %v615_v28  ;;  %876 = vmatpush.msra.mxu3 %v618_v25 }
  0xa2   : > { %881 = vmatpush.msra.mxu2 %v616_v27  ;;  %880 = vmatpush.msra.mxu1 %v616_v27 }
  0xa3   : > { %645 = vmatpush.msra.mxu0 %v614_v32  ;;  %879 = vmatpush.msra.mxu3 %v617_v26 }
  0xa4   : > { %884 = vmatpush.msra.mxu2 %v615_v28  ;;  %883 = vmatpush.msra.mxu1 %v615_v28 }
  0xa5   : > { %882 = vmatpush.msra.mxu3 %v616_v27 }
  0xa6   : > { %333 = vrot.lane.b32.xlu2 %v1049_v48, %s918_s20  ;;  %418 = vrot.lane.b32.xlu0 %v1051_v49, %s920_s22 }
  0xa7   : > { %435 = vrot.lane.b32.xlu1 %v304_v50, %s921_s23  ;;  %887 = vmatpush.msra.mxu2 %v614_v32 }
  0xa8   : > { %886 = vmatpush.msra.mxu1 %v614_v32  ;;  %885 = vmatpush.msra.mxu3 %v615_v28 }
  0xaa   : > { %888 = vmatpush.msra.mxu3 %v614_v32 }
  0xae   : > { %485 = vrot.lane.b32.xlu2 %v295_v40, %s922_s24  ;;  %389 = vrot.lane.b32.xlu0 %v1058_v51, %s919_s21 }
  0xaf   : > { %460 = vrot.lane.b32.xlu1 %v285_v52, %s923_s25 }
  0xb6   : > { %468 = vrot.lane.b32.xlu2 %v1064_v53, %s923_s25  ;;  %365 = vrot.lane.b32.xlu0 %v1066_v54, %s917_s19 }
  0xb7   : > { %443 = vrot.lane.b32.xlu1 %v1072_v55, %s921_s23 }
  0xbe   : > { %510 = vrot.lane.b32.xlu0 %v1040_v45, %s924_s26  ;;  %397 = vrot.lane.b32.xlu2 %v1078_v58, %s919_s21 }
  0xbf   : > { %414 = vrot.lane.b32.xlu1 %v1082_v59, %s920_s22 }
  0xc6   : > { %439 = vrot.lane.b32.xlu0 %v1088_v60, %s921_s23  ;;  %355 = vrot.lane.b32.xlu2 %v304_v50, %s917_s19 }
  0xc7   : > { %323 = vrot.lane.b32.xlu1 %v294_v47, %s918_s20 }
  0xce   : > { %422 = vrot.lane.b32.xlu0 %v1094_v61, %s920_s22  ;;  %518 = vrot.lane.b32.xlu2 %v1066_v54, %s924_s26 }
  0xcf   : > { %493 = vrot.lane.b32.xlu1 %v1049_v48, %s922_s24 }
  0xd6   : > { %331 = vrot.lane.b32.xlu0 %v1051_v49, %s918_s20  ;;  %447 = vrot.lane.b32.xlu2 %v1102_v62, %s921_s23 }
  0xd7   : > { %464 = vrot.lane.b32.xlu1 %v1104_v63, %s923_s25 }
  0xde   : > { %489 = vrot.lane.b32.xlu0 %v1032_v44, %s922_s24  ;;  %412 = vrot.lane.b32.xlu2 %v295_v40, %s920_s22 }
  0xdf   : > { %387 = vrot.lane.b32.xlu1 %v285_v52, %s919_s21 }
  0xe6   : > { %472 = vrot.lane.b32.xlu0 %v1118_v1, %s923_s25  ;;  %327 = vrot.lane.b32.xlu2 %v1082_v59, %s918_s20 }
  0xe7   : > { %363 = vrot.lane.b32.xlu1 %v1072_v55, %s917_s19 }
  0xe8   : > { %v1126_v2 = vpop.permute.xlu2 %385 }
  0xee   : > { %395 = vrot.lane.b32.xlu0 %v1064_v53, %s919_s21  ;;  %497 = vrot.lane.b32.xlu2 %v1128_v3, %s922_s24 }
  0xef   : > { %514 = vrot.lane.b32.xlu1 %v1030_v43, %s924_s26 }
  0xf0   : > { %v326_v4 = vpop.permute.xlu2 %325 }
  0xf1   : > { %v536_v8 = vsel %vm246_vm0, %v285_v52, %v326_v4 }
  0xf6   : > { %359 = vrot.lane.b32.xlu0 %v1088_v60, %s917_s19  ;;  %462 = vrot.lane.b32.xlu2 %v1058_v51, %s923_s25 }
  0xf7   : > { %437 = vrot.lane.b32.xlu1 %v1040_v45, %s921_s23 }
  0xf8   : > { %v358_v9 = vpop.permute.xlu2 %357 }
  0xf9   : > { %v1153_v10 = vsel %vm542_vm3, %v536_v8, %v358_v9 }
  0xfe   : > { %522 = vrot.lane.b32.xlu0 %v1164_v14, %s924_s26  ;;  %391 = vrot.lane.b32.xlu2 %v1104_v63, %s919_s21 }
  0xff   : > { %420 = vrot.lane.b32.xlu1 %v1049_v48, %s920_s22 }
 0x100   : > { %v1177_v17 = vpop.permute.xlu2 %333 }
 0x106   : > { %445 = vrot.lane.b32.xlu0 %v1066_v54, %s921_s23  ;;  %367 = vrot.lane.b32.xlu2 %v1102_v62, %s917_s19 }
 0x107   : > { %335 = vrot.lane.b32.xlu1 %v1094_v61, %s918_s20 }
 0x108   : > { %v1197_v22 = vpop.permute.xlu2 %485  ;;  %v1199_v23 = vpop.permute.xlu0 %361 }
 0x109   : > { %v1201_v24 = vpop.permute.xlu1 %329 }
 0x10e   : > { %416 = vrot.lane.b32.xlu0 %v1032_v44, %s920_s22  ;;  %512 = vrot.lane.b32.xlu2 %v1088_v60, %s924_s26  ;;  %v543_v44 = vsel %vm542_vm3, %v534_v42, %v1175_v16 }
 0x10f   : > { %487 = vrot.lane.b32.xlu1 %v1082_v59, %s922_s24  ;;  %v552_v52 = vsel %vm551_vm4, %v543_v44, %v1126_v2  ;;  %v302_v2 = vld [vmem:[#allocation2 + $0x91] sm:$0xff] }
 0x110   : > { %v1221_v29 = vpop.permute.xlu2 %468  ;;  %v1223_v30 = vpop.permute.xlu0 %393 }
 0x111   : > { %v411_v31 = vpop.permute.xlu1 %410 }
 0x112   : > { %v561_v56 = vsel %vm560_vm5, %v552_v52, %v411_v31 }
 0x116   : > { %399 = vrot.lane.b32.xlu0 %v1118_v1, %s919_s21  ;;  %495 = vrot.lane.b32.xlu2 %v1094_v61, %s922_s24  ;;  %s840_s21 = sshll.u32 %s1390_s13, 6 }
 0x117   : > { %470 = vrot.lane.b32.xlu1 %v1078_v58, %s923_s25 }
 0x118   : > { %v398_v33 = vpop.permute.xlu2 %397  ;;  %v419_v34 = vpop.permute.xlu0 %418 }
 0x119   : > { %v436_v35 = vpop.permute.xlu1 %435 }
 0x11a   : > { %v570_v59 = vsel %vm569_vm6, %v561_v56, %v436_v35 }
 0x11e   : > { %424 = vrot.lane.b32.xlu0 %v1128_v3, %s920_s22  ;;  %520 = vrot.lane.b32.xlu2 %v1102_v62, %s924_s26 }
 0x11f   : > { %441 = vrot.lane.b32.xlu1 %v1030_v43, %s921_s23  ;;  %v540_v43 = vsel %vm246_vm0, %v1064_v53, %v1177_v17 }
 0x120   : > { %v356_v36 = vpop.permute.xlu2 %355  ;;  %v1240_v37 = vpop.permute.xlu0 %389 }
 0x121   : > { %v461_v40 = vpop.permute.xlu1 %460 }
 0x122   : > { %v579_v53 = vsel %vm578_vm7, %v570_v59, %v461_v40 }
 0x123   : > { %v588_v61 = vsel %vm587_vm8, %v579_v53, %v1197_v22 }
 0x126   : > { %449 = vrot.lane.b32.xlu0 %v1164_v14, %s921_s23  ;;  %474 = vrot.lane.b32.xlu2 %v292_v41, %s923_s25 }
 0x127   : > { %466 = vrot.lane.b32.xlu1 %v1042_v46, %s923_s25  ;;  %s828_s25 = sshll.u32 %s1390_s13, 1 }
 0x128   : > { %v519_v45 = vpop.permute.xlu2 %518  ;;  %v366_v47 = vpop.permute.xlu0 %365  ;;  %s181_s16 = scalar_lea.vmem %s1388_s3, %s828_s25 }
 0x129   : > { %v444_v48 = vpop.permute.xlu1 %443  ;;  %v549_v50 = vsel %vm542_vm3, %v540_v43, %v366_v47 }
 0x12a   : > { %v558_v54 = vsel %vm551_vm4, %v549_v50, %v398_v33 }
 0x12e   : > { %516 = vrot.lane.b32.xlu0 %v1072_v55, %s924_s26  ;;  %524 = vrot.lane.b32.xlu2 %v312_v57, %s924_s26  ;;  %v538_v55 = vsel %vm246_vm0, %v1104_v63, %v1201_v24  ;;  %v554_v24 = vsel %vm551_vm4, %v1153_v10, %v1240_v37 }
 0x12f   : > { %491 = vrot.lane.b32.xlu1 %v1051_v49, %s922_s24  ;;  %v547_v5 = vsel %vm542_vm3, %v538_v55, %v1199_v23 }
 0x130   : > { %v511_v60 = vpop.permute.xlu0 %510  ;;  %v448_v0 = vpop.permute.xlu2 %447  ;;  %v556_v8 = vsel %vm551_vm4, %v547_v5, %v1223_v30 }
 0x131   : > { %v415_v62 = vpop.permute.xlu1 %414  ;;  %v597_v1 = vsel %vm596_vm9, %v588_v61, %v511_v60  ;;  %v565_v9 = vsel %vm560_vm5, %v556_v8, %v419_v34 }
 0x132   : > { %829 = vmatmul.msk.f32.vlgmr.msra.gmra.mxu0 %vm605_vm10, %v597_v1  ;;  %v574_v11 = vsel %vm569_vm6, %v565_v9, %v444_v48  ;;  %v563_v25 = vsel %vm560_vm5, %v554_v24, %v415_v62 }
 0x133   : > { %v583_v13 = vsel %vm578_vm7, %v574_v11, %v1221_v29 }
 0x137   : > { %499 = vrot.lane.b32.xlu1 %v302_v2, %s922_s24  ;;  %s1344_s24 = scalar_lea.vmem %s1387_s2, %s840_s21 }
 0x138   : > { %v440_v3 = vpop.permute.xlu0 %439  ;;  %v413_v6 = vpop.permute.xlu2 %412 }
 0x139   : > { %v324_v49 = vpop.permute.xlu1 %323  ;;  %v572_v26 = vsel %vm569_vm6, %v563_v25, %v440_v3 }
 0x13a   : > { %v535_v4 = vsel %vm246_vm0, %v1024_v38, %v324_v49 }
 0x13b   : > { %v544_v7 = vsel %vm542_vm3, %v535_v4, %v356_v36 }
 0x140   : > { %v423_v12 = vpop.permute.xlu0 %422  ;;  %v328_v15 = vpop.permute.xlu2 %327 }
 0x141   : > { %v494_v63 = vpop.permute.xlu1 %493  ;;  %v567_v34 = vsel %vm560_vm5, %v558_v54, %v423_v12  ;;  %v537_v9 = vsel %vm246_vm0, %v1058_v51, %v328_v15 }
 0x142   : > { %v592_v38 = vsel %vm587_vm8, %v583_v13, %v494_v63  ;;  %v576_v10 = vsel %vm569_vm6, %v567_v34, %v448_v0 }
 0x143   : > { %v601_v14 = vsel %vm596_vm9, %v592_v38, %v519_v45 }
 0x144   : > { %833 = vmatmul.msk.f32.vlgmr.msra.gmra.mxu2 %vm605_vm10, %v601_v14 }
 0x148   : > { %v332_v16 = vpop.permute.xlu0 %331  ;;  %v498_v18 = vpop.permute.xlu2 %497 }
 0x149   : > { %v465_v17 = vpop.permute.xlu1 %464  ;;  %v539_v60 = vsel %vm246_vm0, %v1042_v46, %v332_v16 }
 0x14a   : > { %v581_v27 = vsel %vm578_vm7, %v572_v26, %v465_v17 }
 0x150   : > { %v490_v19 = vpop.permute.xlu0 %489  ;;  %v463_v22 = vpop.permute.xlu2 %462 }
 0x151   : > { %v388_v20 = vpop.permute.xlu1 %387  ;;  %v590_v29 = vsel %vm587_vm8, %v581_v27, %v490_v19 }
 0x152   : > { %v553_v47 = vsel %vm551_vm4, %v544_v7, %v388_v20 }
 0x153   : > { %v562_v48 = vsel %vm560_vm5, %v553_v47, %v413_v6 }
 0x158   : > { %v473_v21 = vpop.permute.xlu0 %472  ;;  %v392_v32 = vpop.permute.xlu2 %391 }
 0x159   : > { %v364_v23 = vpop.permute.xlu1 %363  ;;  %v585_v36 = vsel %vm578_vm7, %v576_v10, %v473_v21 }
 0x15a   : > { %v594_v40 = vsel %vm587_vm8, %v585_v36, %v498_v18  ;;  %v548_v61 = vsel %vm542_vm3, %v539_v60, %v364_v23 }
 0x160   : > { %v396_v28 = vpop.permute.xlu0 %395  ;;  %v368_v37 = vpop.permute.xlu2 %367 }
 0x161   : > { %v515_v30 = vpop.permute.xlu1 %514  ;;  %v557_v62 = vsel %vm551_vm4, %v548_v61, %v396_v28 }
 0x162   : > { %v599_v31 = vsel %vm596_vm9, %v590_v29, %v515_v30 }
 0x163   : > { %831 = vmatmul.msk.f32.vlgmr.msra.gmra.mxu1 %vm605_vm10, %v599_v31 }
 0x168   : > { %v360_v33 = vpop.permute.xlu0 %359  ;;  %v513_v44 = vpop.permute.xlu2 %512 }
 0x169   : > { %v438_v35 = vpop.permute.xlu1 %437  ;;  %v546_v11 = vsel %vm542_vm3, %v537_v9, %v360_v33 }
 0x16a   : > { %v571_v50 = vsel %vm569_vm6, %v562_v48, %v438_v35  ;;  %v555_v12 = vsel %vm551_vm4, %v546_v11, %v392_v32 }
 0x16b   : > { %v580_v57 = vsel %vm578_vm7, %v571_v50, %v463_v22 }
 0x170   : > { %v523_v39 = vpop.permute.xlu0 %522  ;;  %v496_v54 = vpop.permute.xlu2 %495 }
 0x171   : > { %v421_v41 = vpop.permute.xlu1 %420  ;;  %v603_v42 = vsel %vm596_vm9, %v594_v40, %v523_v39 }
 0x172   : > { %835 = vmatmul.msk.f32.vlgmr.msra.gmra.mxu3 %vm605_vm10, %v603_v42  ;;  %v566_v0 = vsel %vm560_vm5, %v557_v62, %v421_v41 }
 0x178   : > { %v446_v43 = vpop.permute.xlu0 %445  ;;  %v521_v49 = vpop.permute.xlu2 %520 }
 0x179   : > { %v336_v45 = vpop.permute.xlu1 %335  ;;  %v575_v2 = vsel %vm569_vm6, %v566_v0, %v446_v43 }
 0x17a   : > { %v541_v13 = vsel %vm246_vm0, %v1078_v58, %v336_v45 }
 0x17b   : > { %v550_v51 = vsel %vm542_vm3, %v541_v13, %v368_v37 }
 0x180   : > { %v417_v52 = vpop.permute.xlu0 %416  ;;  %v475_v14 = vpop.permute.xlu2 %474 }
 0x181   : > { %v488_v56 = vpop.permute.xlu1 %487  ;;  %v564_v63 = vsel %vm560_vm5, %v555_v12, %v417_v52 }
 0x182   : > { %v589_v59 = vsel %vm587_vm8, %v580_v57, %v488_v56 }
 0x183   : > { %v598_v53 = vsel %vm596_vm9, %v589_v59, %v513_v44 }
 0x184   : > { %830 = vmatmul.msk.f32.gmra.mxu0 %vm605_vm10, %v598_v53 }
 0x188   : > { %v400_v1 = vpop.permute.xlu0 %399  ;;  %v525_v22 = vpop.permute.xlu2 %524 }
 0x189   : > { %v471_v55 = vpop.permute.xlu1 %470  ;;  %v559_v20 = vsel %vm551_vm4, %v550_v51, %v400_v1 }
 0x18a   : > { %v584_v3 = vsel %vm578_vm7, %v575_v2, %v471_v55 }
 0x18b   : > { %v593_v4 = vsel %vm587_vm8, %v584_v3, %v496_v54 }
 0x18c   : > { %v602_v5 = vsel %vm596_vm9, %v593_v4, %v521_v49 }
 0x18d   : > { %834 = vmatmul.msk.f32.gmra.mxu2 %vm605_vm10, %v602_v5 }
 0x190   : > { %v425_v46 = vpop.permute.xlu0 %424 }
 0x191   : > { %v442_v6 = vpop.permute.xlu1 %441  ;;  %v568_v58 = vsel %vm560_vm5, %v559_v20, %v425_v46 }
 0x192   : > { %v573_v38 = vsel %vm569_vm6, %v564_v63, %v442_v6 }
 0x198   : > { %v450_v7 = vpop.permute.xlu0 %449 }
 0x199   : > { %v467_v8 = vpop.permute.xlu1 %466  ;;  %v577_v21 = vsel %vm569_vm6, %v568_v58, %v450_v7 }
 0x19a   : > { %v582_v17 = vsel %vm578_vm7, %v573_v38, %v467_v8  ;;  %v586_v23 = vsel %vm578_vm7, %v577_v21, %v475_v14 }
 0x1a0   : > { %v517_v16 = vpop.permute.xlu0 %516 }
 0x1a1   : > { %v492_v18 = vpop.permute.xlu1 %491 }
 0x1a2   : > { %v591_v19 = vsel %vm587_vm8, %v582_v17, %v492_v18 }
 0x1a3   : > { %v600_v15 = vsel %vm596_vm9, %v591_v19, %v517_v16 }
 0x1a4   : > { %832 = vmatmul.msk.f32.gmra.mxu1 %vm605_vm10, %v600_v15 }
 0x1a9   : > { %v500_v24 = vpop.permute.xlu1 %499 }
 0x1aa   : > { %v595_v25 = vsel %vm587_vm8, %v586_v23, %v500_v24 }
 0x1ab   : > { %v604_v26 = vsel %vm596_vm9, %v595_v25, %v525_v22 }
 0x1ac   : > { %836 = vmatmul.msk.f32.gmra.mxu3 %vm605_vm10, %v604_v26 }
 0x1af   : > { %v647_v27 = vpop.f32.mrf.mxu0 }
 0x1b0   : > { %725 = vst.msk [vmem:[%s1344_s24] sm:$0xff] %vm542_vm3, %v647_v27  ;;  %v692_v34 = vmul.f32 %v647_v27, %v647_v27  ;;  %v671_v10 = vsel %vm542_vm3, %v647_v27, 0.0 }
 0x1b2   : > { %v700_v39 = vsel %vm542_vm3, %v692_v34, 0.0 }
 0x1c7   : > { %v659_v28 = vpop.f32.mrf.mxu2 }
 0x1c8   : > { %729 = vst.msk [vmem:[%s1344_s24 + $0x20] sm:$0xff] %vm542_vm3, %v659_v28  ;;  %v696_v54 = vmul.f32 %v659_v28, %v659_v28  ;;  %v678_v59 = vsel %vm542_vm3, %v659_v28, 0.0 }
 0x1ca   : > { %v707_v60 = vsel %vm542_vm3, %v696_v54, 0.0 }
 0x1e0   : > { %v653_v29 = vpop.f32.mrf.mxu1 }
 0x1e1   : > { %727 = vst.msk [vmem:[%s1344_s24 + $0x10] sm:$0xff] %vm542_vm3, %v653_v29  ;;  %v694_v40 = vmul.f32 %v653_v29, %v653_v29  ;;  %v674_v42 = vsel %vm542_vm3, %v653_v29, 0.0 }
 0x1e3   : > { %v703_v45 = vsel %vm542_vm3, %v694_v40, 0.0 }
 0x1f5   : > { %v665_v30 = vpop.f32.mrf.mxu3 }
 0x1f6   : > { %731 = vst.msk [vmem:[%s1344_s24 + $0x30] sm:$0xff] %vm542_vm3, %v665_v30  ;;  %v698_v2 = vmul.f32 %v665_v30, %v665_v30  ;;  %v682_v49 = vsel %vm542_vm3, %v665_v30, 0.0 }
 0x1f8   : > { %v711_v46 = vsel %vm542_vm3, %v698_v2, 0.0 }
 0x201   : > { %v650_v31 = vpop.f32.mrf.mxu0 }
 0x202   : > { %726 = vst.msk [vmem:[%s1344_s24 + $0x8] sm:$0xff] %vm542_vm3, %v650_v31  ;;  %v693_v33 = vmul.f32 %v650_v31, %v650_v31  ;;  %v672_v35 = vsel %vm542_vm3, %v650_v31, 0.0 }
 0x203   : > { %v673_v37 = vadd.f32 %v672_v35, %v671_v10 }
 0x204   : > { %v701_v36 = vsel %vm542_vm3, %v693_v33, 0.0 }
 0x205   : > { %v702_v41 = vadd.f32 %v701_v36, %v700_v39  ;;  %v675_v43 = vadd.f32 %v674_v42, %v673_v37 }
 0x207   : > { %v704_v52 = vadd.f32 %v703_v45, %v702_v41 }
 0x210   : > { %v662_v32 = vpop.f32.mrf.mxu2 }
 0x211   : > { %730 = vst.msk [vmem:[%s1344_s24 + $0x28] sm:$0xff] %vm542_vm3, %v662_v32  ;;  %v697_v61 = vmul.f32 %v662_v32, %v662_v32  ;;  %v680_v0 = vsel %vm542_vm3, %v662_v32, 0.0 }
 0x213   : > { %v709_v55 = vsel %vm542_vm3, %v697_v61, 0.0 }
 0x221   : > { %v656_v44 = vpop.f32.mrf.mxu1 }
 0x222   : > { %v676_v47 = vsel %vm542_vm3, %v656_v44, 0.0  ;;  %v695_v48 = vmul.f32 %v656_v44, %v656_v44  ;;  %728 = vst.msk [vmem:[%s1344_s24 + $0x18] sm:$0xff] %vm542_vm3, %v656_v44 }
 0x223   : > { %v677_v50 = vadd.f32 %v676_v47, %v675_v43 }
 0x224   : > { %v705_v56 = vsel %vm542_vm3, %v695_v48, 0.0 }
 0x225   : > { %v706_v57 = vadd.f32 %v705_v56, %v704_v52  ;;  %v679_v53 = vadd.f32 %v678_v59, %v677_v50 }
 0x227   : > { %v708_v62 = vadd.f32 %v707_v60, %v706_v57  ;;  %v681_v1 = vadd.f32 %v680_v0, %v679_v53 }
 0x229   : > { %v710_v3 = vadd.f32 %v709_v55, %v708_v62  ;;  %v683_v5 = vadd.f32 %v682_v49, %v681_v1 }
 0x22b   : > { %v712_v9 = vadd.f32 %v711_v46, %v710_v3 }
 0x22f   : > { %v668_v4 = vpop.f32.mrf.mxu3 }
 0x230   : > { %v684_v6 = vsel %vm542_vm3, %v668_v4, 0.0  ;;  %v699_v7 = vmul.f32 %v668_v4, %v668_v4  ;;  %732 = vst.msk [vmem:[%s1344_s24 + $0x38] sm:$0xff] %vm542_vm3, %v668_v4 }
 0x231   : > { %v685_v8 = vadd.f32 %v684_v6, %v683_v5 }
 0x232   : > { %v713_v11 = vsel %vm542_vm3, %v699_v7, 0.0 }
 0x233   : > { %v686_v12 = vrot.slane %v685_v8, 4  ;;  %v714_v63 = vadd.f32 %v713_v11, %v712_v9 }
 0x235   : > { %v687_v13 = vadd.f32 %v686_v12, %v685_v8  ;;  %v715_v38 = vrot.slane %v714_v63, 4 }
 0x237   : > { %v688_v14 = vrot.slane %v687_v13, 2  ;;  %v716_v16 = vadd.f32 %v715_v38, %v714_v63 }
 0x239   : > { %v689_v17 = vadd.f32 %v688_v14, %v687_v13  ;;  %v717_v18 = vrot.slane %v716_v16, 2 }
 0x23b   : > { %v690_v19 = vrot.slane %v689_v17, 1  ;;  %v718_v51 = vadd.f32 %v717_v18, %v716_v16 }
 0x23d   : > { %v719_v15 = vrot.slane %v718_v51, 1  ;;  %v691_v20 = vadd.f32 %v690_v19, %v689_v17 }
 0x23f   : > { %v720_v58 = vadd.f32 %v719_v15, %v718_v51 }
 0x241   : > { %v722_v21 = vsel %vm721_vm11, %v691_v20, %v720_v58 }
 0x242   : > { %724 = vst.msk [vmem:[%s181_s16] sm:$0x3] %vm723_vm12, %v722_v21 }
 0x243 PF: > { %s14_s12 = sadd.s32 1, %s913_s12  }
 0x244   : > { %p11_p4 = scmp.ge.s32.totalorder %s14_s12, 4  }
 0x246   :  { %13 = sbr.rel (!%p11_p4) target bundleno = 1 (0x1), region = 72 }

// kernel: down_forward.4
= control target key start
LH: loop header
LB: loop body
LE: loop exit
PB: predicated region body
PF: predicated region fallthrough
CT: control target
= control target key end

     0   :  { %s984_s18 = smov 0   ;;  %s1436_s0 = inlined_call_operand.vmem [shape: f32[2,8,8,8], index: 0, kind: input, shape index: {}]   ;;  %s1437_s1 = inlined_call_operand.vmem [shape: f32[1,8], index: 1, kind: input, shape index: {}]   ;;  %s1438_s2 = inlined_call_operand.vmem [shape: f32[1,8], index: 2, kind: input, shape index: {}]   ;;  %s1439_s3 = inlined_call_operand.vmem [shape: f32[128,8], index: 3, kind: input, shape index: {}]   ;;  %s1440_s4 = inlined_call_operand.vmem [shape: f32[2,8,8,8], index: 4, kind: output, shape index: {0}]   ;;  %s1441_s5 = inlined_call_operand.vmem [shape: f32[2,2,8], index: 5, kind: output, shape index: {1}]  }
   0x1 LB: > { %s848_s19 = sadd.s32 4294967295, %s943_s18   ;;  %p852_p0 = scmp.ge.s32.totalorder %s943_s18, 1  ;;  %s943_s18 = sphi %s984_s18, %s16_s18  }
   0x2   : > { %p190_p1 = scmp.lt.s32.totalorder %s943_s18, 3 }
   0x4   : > { %p191_p2 = pnand %p852_p0, %p190_p1 }
   0x5   : > { %p222_p3 = scmp.lt.s32.totalorder (!%p191_p2), %s848_s19, 1  ;;  %s946_s26 = smov (!%p191_p2), 8  }
   0x6   : > { %194 = sbr.rel (%p191_p2) target bundleno = 473 (0x1d9), region = 36  ;;  %s947_s29 = smov (!%p191_p2), 16  }
   0x7   : > { %s948_s30 = smov (!%p191_p2), 24   ;;  %s949_s6 = smov (!%p191_p2), 32  }
   0x8   : > { %s950_s7 = smov (!%p191_p2), 40   ;;  %s951_s8 = smov (!%p191_p2), 48  }
   0x9   : > { %s952_s9 = smov (!%p191_p2), 56   ;;  %s953_s10 = smov (!%p191_p2), 64  }
   0xb   : > { %vm276_vm0 = vcmask 64512   ;;  %vm278_vm1 = vcmask 58368   ;;  %v945_v0 = vmov 0.0   ;;  %vm283_vm2 = vcmask 57344   ;;  %s1443_s19 = smov (!%p222_p3, %s848_s19), 1  ;;  %v659_v63 = vld [vmem:[%s1439_s3 + $0x78] sm:$0xff] }
   0xc   : > { %277 = vst.msk [vmem:[#allocation2] sm:$0xff] %vm276_vm0, %v945_v0  ;;  %s868_s20 = sshll.u32 %s1443_s19, 6  ;;  %v1014_v2 = vld [vmem:[%s1437_s1] ss:$0 sm:$0xff]  ;;  %660 = vmatpush.msra.mxu0 %v659_v63  ;;  %871 = vmatpush.msra.mxu2 %v659_v63  ;;  %vm572_vm3 = vcmask 130048   ;;  %vm581_vm4 = vcmask 195584  }
   0xd   : > { %279 = vst.msk [vmem:[#allocation2 + $0x8] sm:$0x3] %vm278_vm1, %v945_v0  ;;  %s1007_s23 = scalar_lea.vmem %s1436_s0, %s868_s20  ;;  %v1028_v7 = vld [vmem:[%s1438_s2] ss:$0 sm:$0xff]  ;;  %870 = vmatpush.msra.mxu1 %v659_v63  ;;  %872 = vmatpush.msra.mxu3 %v659_v63  ;;  %vm590_vm5 = vcmask 261120   ;;  %vm599_vm6 = vcmask 326656  }
   0xe   : > { %281 = vst.msk [vmem:[#allocation2 + $0x90] sm:$0xff] %vm276_vm0, %v945_v0  ;;  %v239_v3 = vld [vmem:[%s1007_s23 + $0x18] sm:$0xff]  ;;  %v237_v4 = vld [vmem:[%s1007_s23 + $0x8] sm:$0xff]  ;;  %v236_v5 = vld [vmem:[%s1007_s23] sm:$0xff]  ;;  %vm608_vm7 = vcmask 392192   ;;  %vm617_vm8 = vcmask 457728  }
   0xf   : > { %282 = vst.msk [vmem:[#allocation2 + $0x98] sm:$0x3] %vm278_vm1, %v945_v0  ;;  %v251_v6 = vmul.f32 %v1014_v2, %v239_v3  ;;  %v240_v8 = vld [vmem:[%s1007_s23 + $0x20] sm:$0xff]  ;;  %v249_v9 = vmul.f32 %v1014_v2, %v237_v4  ;;  %v241_v10 = vld [vmem:[%s1007_s23 + $0x28] sm:$0xff]  ;;  %v248_v12 = vmul.f32 %v1014_v2, %v236_v5  ;;  %v238_v17 = vld [vmem:[%s1007_s23 + $0x10] sm:$0xff]  ;;  %vm626_vm9 = vcmask 523264  }
  0x10   : > { %294 = vst.msk [vmem:[#allocation2 + $0x9] sm:$0x1] %vm283_vm2, %v945_v0  ;;  %v252_v13 = vmul.f32 %v1014_v2, %v240_v8  ;;  %v253_v15 = vmul.f32 %v1014_v2, %v241_v10  ;;  %v250_v19 = vmul.f32 %v1014_v2, %v238_v17  ;;  %v242_v29 = vld [vmem:[%s1007_s23 + $0x30] sm:$0xff]  ;;  %v243_v50 = vld [vmem:[%s1007_s23 + $0x38] sm:$0xff]  ;;  %v656_v4 = vld [vmem:[%s1439_s3 + $0x60] sm:$0xff]  ;;  %vm635_vm10 = vcmask 588800  }
  0x11   : > { %284 = vst.msk [vmem:[#allocation2] sm:$0x1] %vm283_vm2, %v945_v0  ;;  %v263_v14 = vadd.f32 %v1028_v7, %v251_v6  ;;  %v261_v16 = vadd.f32 %v1028_v7, %v249_v9  ;;  %v260_v18 = vadd.f32 %v1028_v7, %v248_v12  ;;  %v254_v30 = vmul.f32 %v1014_v2, %v242_v29  ;;  %v655_v5 = vld [vmem:[%s1439_s3 + $0x58] sm:$0xff]  ;;  %v654_v6 = vld [vmem:[%s1439_s3 + $0x50] sm:$0xff]  ;;  %v653_v8 = vld [vmem:[%s1439_s3 + $0x48] sm:$0xff] }
  0x12   : > { %285 = vst.msk [vmem:[#allocation2 + $0x10] sm:$0x1] %vm283_vm2, %v945_v0  ;;  %v264_v20 = vadd.f32 %v1028_v7, %v252_v13  ;;  %v265_v22 = vadd.f32 %v1028_v7, %v253_v15  ;;  %v262_v24 = vadd.f32 %v1028_v7, %v250_v19  ;;  %v255_v51 = vmul.f32 %v1014_v2, %v243_v50  ;;  %v651_v13 = vld [vmem:[%s1439_s3 + $0x38] sm:$0xff]  ;;  %v649_v15 = vld [vmem:[%s1439_s3 + $0x28] sm:$0xff]  ;;  %v648_v19 = vld [vmem:[%s1439_s3 + $0x20] sm:$0xff] }
  0x13   : > { %286 = vst.msk [vmem:[#allocation2 + $0x20] sm:$0x1] %vm283_vm2, %v945_v0  ;;  %v271_v21 = vmax.f32 %v263_v14, 0.0  ;;  %v269_v23 = vmax.f32 %v261_v16, 0.0  ;;  %v268_v25 = vmax.f32 %v260_v18, 0.0  ;;  %v266_v34 = vadd.f32 %v1028_v7, %v254_v30  ;;  %v650_v14 = vld [vmem:[%s1439_s3 + $0x30] sm:$0xff] }
  0x14   : > { %v323_v1 = vld [vmem:[#allocation2 + $0x1] sm:$0xff]  ;;  %287 = vst.msk [vmem:[#allocation2 + $0x30] sm:$0x1] %vm283_vm2, %v945_v0  ;;  %v272_v26 = vmax.f32 %v264_v20, 0.0  ;;  %v273_v27 = vmax.f32 %v265_v22, 0.0  ;;  %v270_v28 = vmax.f32 %v262_v24, 0.0  ;;  %v267_v52 = vadd.f32 %v1028_v7, %v255_v51 }
  0x15   : > { %351 = vrot.lane.b32.xlu0 %v323_v1, %s946_s26  ;;  %288 = vst.msk [vmem:[#allocation2 + $0x40] sm:$0x1] %vm283_vm2, %v945_v0  ;;  %v274_v35 = vmax.f32 %v266_v34, 0.0  ;;  %v657_v1 = vld [vmem:[%s1439_s3 + $0x68] sm:$0xff]  ;;  %vm751_vm11 = vcmask 1040384  }
  0x16   : > { %289 = vst.msk [vmem:[#allocation2 + $0x50] sm:$0x1] %vm283_vm2, %v945_v0  ;;  %v275_v53 = vmax.f32 %v267_v52, 0.0  ;;  %v645_v24 = vld [vmem:[%s1439_s3 + $0x8] sm:$0xff] }
  0x17   : > { %290 = vst.msk [vmem:[#allocation2 + $0x60] sm:$0x1] %vm283_vm2, %v945_v0  ;;  %v333_v11 = vld [vmem:[#allocation2 + $0x2] sm:$0xff] }
  0x18   : > { %291 = vst.msk [vmem:[#allocation2 + $0x70] sm:$0x1] %vm283_vm2, %v945_v0 }
  0x19   : > { %292 = vst.msk [vmem:[#allocation2 + $0x80] sm:$0x1] %vm283_vm2, %v945_v0 }
  0x1a   : > { %293 = vst.msk [vmem:[#allocation2 + $0x90] sm:$0x1] %vm283_vm2, %v945_v0 }
  0x1b   : > { %295 = vst.msk [vmem:[#allocation2 + $0x19] sm:$0x1] %vm283_vm2, %v945_v0 }
  0x1c   : > { %296 = vst.msk [vmem:[#allocation2 + $0x29] sm:$0x1] %vm283_vm2, %v945_v0 }
  0x1d   : > { %383 = vrot.lane.b32.xlu0 %v333_v11, %s947_s29  ;;  %297 = vst.msk [vmem:[#allocation2 + $0x39] sm:$0x1] %vm283_vm2, %v945_v0  ;;  %v652_v11 = vld [vmem:[%s1439_s3 + $0x40] sm:$0xff] }
  0x1e   : > { %298 = vst.msk [vmem:[#allocation2 + $0x49] sm:$0x1] %vm283_vm2, %v945_v0 }
  0x1f   : > { %299 = vst.msk [vmem:[#allocation2 + $0x59] sm:$0x1] %vm283_vm2, %v945_v0 }
  0x20   : > { %300 = vst.msk [vmem:[#allocation2 + $0x69] sm:$0x1] %vm283_vm2, %v945_v0 }
  0x21   : > { %301 = vst.msk [vmem:[#allocation2 + $0x79] sm:$0x1] %vm283_vm2, %v945_v0 }
  0x22   : > { %302 = vst.msk [vmem:[#allocation2 + $0x89] sm:$0x1] %vm283_vm2, %v945_v0 }
  0x23   : > { %303 = vst.msk [vmem:[#allocation2 + $0x99] sm:$0x1] %vm283_vm2, %v945_v0  ;;  %v658_v0 = vld [vmem:[%s1439_s3 + $0x70] sm:$0xff] }
  0x24   : > { %308 = vst.msk [vmem:[#allocation2 + $0x41] sm:$0xff] %vm276_vm0, %v271_v21  ;;  %661 = vmatpush.msra.mxu0 %v658_v0  ;;  %874 = vmatpush.msra.mxu2 %v658_v0  ;;  %v647_v21 = vld [vmem:[%s1439_s3 + $0x18] sm:$0xff] }
  0x25   : > { %306 = vst.msk [vmem:[#allocation2 + $0x21] sm:$0xff] %vm276_vm0, %v269_v23  ;;  %873 = vmatpush.msra.mxu1 %v658_v0  ;;  %875 = vmatpush.msra.mxu3 %v658_v0  ;;  %v646_v23 = vld [vmem:[%s1439_s3 + $0x10] sm:$0xff] }
  0x26   : > { %305 = vst.msk [vmem:[#allocation2 + $0x11] sm:$0xff] %vm276_vm0, %v268_v25  ;;  %662 = vmatpush.msra.mxu0 %v657_v1  ;;  %877 = vmatpush.msra.mxu2 %v657_v1 }
  0x27   : > { %309 = vst.msk [vmem:[#allocation2 + $0x51] sm:$0xff] %vm276_vm0, %v272_v26  ;;  %876 = vmatpush.msra.mxu1 %v657_v1  ;;  %878 = vmatpush.msra.mxu3 %v657_v1 }
  0x28   : > { %310 = vst.msk [vmem:[#allocation2 + $0x61] sm:$0xff] %vm276_vm0, %v273_v27  ;;  %663 = vmatpush.msra.mxu0 %v656_v4  ;;  %880 = vmatpush.msra.mxu2 %v656_v4  ;;  %v644_v27 = vld [vmem:[%s1439_s3] sm:$0xff] }
  0x29   : > { %307 = vst.msk [vmem:[#allocation2 + $0x31] sm:$0xff] %vm276_vm0, %v270_v28  ;;  %879 = vmatpush.msra.mxu1 %v656_v4  ;;  %881 = vmatpush.msra.mxu3 %v656_v4 }
  0x2a   : > { %311 = vst.msk [vmem:[#allocation2 + $0x71] sm:$0xff] %vm276_vm0, %v274_v35  ;;  %664 = vmatpush.msra.mxu0 %v655_v5  ;;  %883 = vmatpush.msra.mxu2 %v655_v5 }
  0x2b   : > { %v1064_v31 = vld [vmem:[#allocation2 + $0x41] sm:$0xff]  ;;  %312 = vst.msk [vmem:[#allocation2 + $0x81] sm:$0xff] %vm276_vm0, %v275_v53  ;;  %882 = vmatpush.msra.mxu1 %v655_v5  ;;  %884 = vmatpush.msra.mxu3 %v655_v5 }
  0x2c   : > { %v1066_v32 = vld [vmem:[#allocation2 + $0x42] sm:$0xff]  ;;  %359 = vrot.lane.b32.xlu1 %v1064_v31, %s946_s26  ;;  %665 = vmatpush.msra.mxu0 %v654_v6 }
  0x2d   : > { %391 = vrot.lane.b32.xlu2 %v1066_v32, %s947_s29  ;;  %v325_v33 = vld [vmem:[#allocation2 + $0x21] sm:$0xff]  ;;  %v1075_v36 = vld [vmem:[#allocation2 + $0x10] sm:$0xff]  ;;  %886 = vmatpush.msra.mxu2 %v654_v6 }
  0x2e   : > { %355 = vrot.lane.b32.xlu0 %v325_v33, %s946_s26  ;;  %v324_v37 = vld [vmem:[#allocation2 + $0x11] sm:$0xff]  ;;  %v1077_v38 = vld [vmem:[#allocation2 + $0x22] sm:$0xff]  ;;  %666 = vmatpush.msra.mxu0 %v653_v8 }
  0x2f   : > { %v1084_v39 = vld [vmem:[#allocation2 + $0x50] sm:$0xff]  ;;  %v1086_v41 = vld [vmem:[#allocation2 + $0x61] sm:$0xff]  ;;  %885 = vmatpush.msra.mxu1 %v654_v6  ;;  %887 = vmatpush.msra.mxu3 %v654_v6 }
  0x30   : > { %v334_v40 = vld [vmem:[#allocation2 + $0x12] sm:$0xff]  ;;  %v1095_v43 = vld [vmem:[#allocation2 + $0x20] sm:$0xff]  ;;  %667 = vmatpush.msra.mxu0 %v652_v11  ;;  %889 = vmatpush.msra.mxu2 %v653_v8 }
  0x31   : > { %v1093_v42 = vld [vmem:[#allocation2 + $0x51] sm:$0xff]  ;;  %v1106_v46 = vld [vmem:[#allocation2 + $0x60] sm:$0xff]  ;;  %888 = vmatpush.msra.mxu1 %v653_v8  ;;  %890 = vmatpush.msra.mxu3 %v653_v8 }
  0x32   : > { %v1102_v44 = vld [vmem:[#allocation2 + $0x30] sm:$0xff]  ;;  %v1114_v47 = vld [vmem:[#allocation2 + $0x62] sm:$0xff]  ;;  %668 = vmatpush.msra.mxu0 %v651_v13  ;;  %892 = vmatpush.msra.mxu2 %v652_v11 }
  0x33   : > { %v1104_v45 = vld [vmem:[#allocation2 + $0x52] sm:$0xff]  ;;  %v1144_v56 = vld [vmem:[#allocation2 + $0x40] sm:$0xff]  ;;  %891 = vmatpush.msra.mxu1 %v652_v11  ;;  %893 = vmatpush.msra.mxu3 %v652_v11 }
  0x34   : > { %415 = vrot.lane.b32.xlu1 %v1075_v36, %s948_s30  ;;  %v1116_v48 = vld [vmem:[#allocation2 + $0x31] sm:$0xff]  ;;  %v1165_v58 = vld [vmem:[#allocation2 + $0x80] sm:$0xff]  ;;  %669 = vmatpush.msra.mxu0 %v650_v14 }
  0x35   : > { %440 = vrot.lane.b32.xlu2 %v324_v37, %s949_s6  ;;  %v1118_v49 = vld [vmem:[#allocation2 + $0x70] sm:$0xff]  ;;  %v1167_v59 = vld [vmem:[#allocation2 + $0x81] sm:$0xff]  ;;  %895 = vmatpush.msra.mxu2 %v651_v13 }
  0x36   : > { %387 = vrot.lane.b32.xlu0 %v1077_v38, %s947_s29  ;;  %v1134_v54 = vld [vmem:[#allocation2 + $0x32] sm:$0xff]  ;;  %v1215_v7 = vld [vmem:[#allocation2 + $0x82] sm:$0xff]  ;;  %670 = vmatpush.msra.mxu0 %v649_v15 }
  0x37   : > { %v1142_v55 = vld [vmem:[#allocation2 + $0x71] sm:$0xff]  ;;  %894 = vmatpush.msra.mxu1 %v651_v13  ;;  %896 = vmatpush.msra.mxu3 %v651_v13 }
  0x38   : > { %v1146_v57 = vld [vmem:[#allocation2 + $0x72] sm:$0xff]  ;;  %671 = vmatpush.msra.mxu0 %v648_v19  ;;  %898 = vmatpush.msra.mxu2 %v650_v14 }
  0x39   : > { %897 = vmatpush.msra.mxu1 %v650_v14  ;;  %899 = vmatpush.msra.mxu3 %v650_v14 }
  0x3a   : > { %672 = vmatpush.msra.mxu0 %v647_v21  ;;  %901 = vmatpush.msra.mxu2 %v649_v15 }
  0x3b   : > { %900 = vmatpush.msra.mxu1 %v649_v15  ;;  %902 = vmatpush.msra.mxu3 %v649_v15 }
  0x3c   : > { %423 = vrot.lane.b32.xlu1 %v1084_v39, %s948_s30  ;;  %673 = vmatpush.msra.mxu0 %v646_v23 }
  0x3d   : > { %465 = vrot.lane.b32.xlu2 %v334_v40, %s950_s7  ;;  %904 = vmatpush.msra.mxu2 %v648_v19 }
  0x3e   : > { %363 = vrot.lane.b32.xlu0 %v1086_v41, %s946_s26  ;;  %674 = vmatpush.msra.mxu0 %v645_v24 }
  0x3f   : > { %903 = vmatpush.msra.mxu1 %v648_v19  ;;  %905 = vmatpush.msra.mxu3 %v648_v19 }
  0x40   : > { %675 = vmatpush.msra.mxu0 %v644_v27  ;;  %907 = vmatpush.msra.mxu2 %v647_v21 }
  0x41   : > { %906 = vmatpush.msra.mxu1 %v647_v21  ;;  %908 = vmatpush.msra.mxu3 %v647_v21 }
  0x42   : > { %910 = vmatpush.msra.mxu2 %v646_v23 }
  0x43   : > { %909 = vmatpush.msra.mxu1 %v646_v23  ;;  %911 = vmatpush.msra.mxu3 %v646_v23 }
  0x44   : > { %448 = vrot.lane.b32.xlu1 %v1093_v42, %s949_s6  ;;  %913 = vmatpush.msra.mxu2 %v645_v24 }
  0x45   : > { %490 = vrot.lane.b32.xlu2 %v1095_v43, %s951_s8  ;;  %912 = vmatpush.msra.mxu1 %v645_v24 }
  0x46   : > { %515 = vrot.lane.b32.xlu0 %v325_v33, %s952_s9  ;;  %914 = vmatpush.msra.mxu3 %v645_v24 }
  0x47   : > { %916 = vmatpush.msra.mxu2 %v644_v27  ;;  %915 = vmatpush.msra.mxu1 %v644_v27 }
  0x48   : > { %917 = vmatpush.msra.mxu3 %v644_v27 }
  0x4c   : > { %419 = vrot.lane.b32.xlu1 %v1102_v44, %s948_s30 }
  0x4d   : > { %473 = vrot.lane.b32.xlu2 %v1104_v45, %s950_s7 }
  0x4e   : > { %498 = vrot.lane.b32.xlu0 %v1106_v46, %s951_s8 }
  0x54   : > { %395 = vrot.lane.b32.xlu1 %v1114_v47, %s947_s29 }
  0x55   : > { %444 = vrot.lane.b32.xlu2 %v1116_v48, %s949_s6 }
  0x56   : > { %427 = vrot.lane.b32.xlu0 %v1118_v49, %s948_s30 }
  0x5c   : > { %540 = vrot.lane.b32.xlu1 %v1077_v38, %s953_s10 }
  0x5d   : > { %353 = vrot.lane.b32.xlu2 %v324_v37, %s946_s26 }
  0x5e   : > { %385 = vrot.lane.b32.xlu0 %v334_v40, %s947_s29  ;;  %v342_v40 = vld [vmem:[#allocation2 + $0x92] sm:$0xff] }
  0x64   : > { %469 = vrot.lane.b32.xlu1 %v1134_v54, %s950_s7 }
  0x65   : > { %523 = vrot.lane.b32.xlu2 %v1086_v41, %s952_s9 }
  0x66   : > { %548 = vrot.lane.b32.xlu0 %v1114_v47, %s953_s10 }
  0x6c   : > { %452 = vrot.lane.b32.xlu1 %v1142_v55, %s949_s6 }
  0x6d   : > { %494 = vrot.lane.b32.xlu2 %v1144_v56, %s951_s8 }
  0x6e   : > { %477 = vrot.lane.b32.xlu0 %v1146_v57, %s950_s7 }
  0x74   : > { %361 = vrot.lane.b32.xlu1 %v1093_v42, %s946_s26 }
  0x75   : > { %417 = vrot.lane.b32.xlu2 %v1095_v43, %s948_s30 }
  0x76   : > { %442 = vrot.lane.b32.xlu0 %v325_v33, %s949_s6  ;;  %v322_v33 = vld [vmem:[#allocation2 + $0x90] sm:$0xff] }
  0x7c   : > { %519 = vrot.lane.b32.xlu1 %v1064_v31, %s952_s9 }
  0x7d   : > { %393 = vrot.lane.b32.xlu2 %v1104_v45, %s947_s29 }
  0x7e   : > { %357 = vrot.lane.b32.xlu0 %v1116_v48, %s946_s26 }
  0x84   : > { %502 = vrot.lane.b32.xlu1 %v1165_v58, %s951_s8 }
  0x85   : > { %544 = vrot.lane.b32.xlu2 %v1066_v32, %s953_s10 }
  0x86   : > { %527 = vrot.lane.b32.xlu0 %v1167_v59, %s952_s9 }
  0x87   : > { %v1175_v60 = vpop.permute.xlu2 %391  ;;  %v1177_v61 = vpop.permute.xlu0 %351 }
  0x8c   : > { %425 = vrot.lane.b32.xlu1 %v1106_v46, %s948_s30 }
  0x8d   : > { %467 = vrot.lane.b32.xlu2 %v1077_v38, %s950_s7 }
  0x8e   : > { %492 = vrot.lane.b32.xlu0 %v1102_v44, %s951_s8 }
  0x8f   : > { %v1185_v62 = vpop.permute.xlu2 %440  ;;  %v1202_v2 = vpop.permute.xlu0 %383 }
  0x94   : > { %389 = vrot.lane.b32.xlu1 %v1134_v54, %s947_s29 }
  0x95   : > { %450 = vrot.lane.b32.xlu2 %v1086_v41, %s949_s6 }
  0x96   : > { %421 = vrot.lane.b32.xlu0 %v1144_v56, %s948_s30 }
  0x97   : > { %v1204_v3 = vpop.permute.xlu2 %465 }
  0x9c   : > { %552 = vrot.lane.b32.xlu1 %v1215_v7, %s953_s10 }
  0x9d   : > { %365 = vrot.lane.b32.xlu2 %v1142_v55, %s946_s26 }
  0x9e   : > { %397 = vrot.lane.b32.xlu0 %v1146_v57, %s947_s29  ;;  %v1226_v9 = vpop.permute.xlu1 %359 }
  0x9f   : > { %v1228_v10 = vpop.permute.xlu2 %490 }
  0xa0   : > { %v356_v12 = vpop.permute.xlu0 %355 }
  0xa1   : > { %v566_v16 = vsel %vm276_vm0, %v1095_v43, %v356_v12 }
  0xa4   : > { %475 = vrot.lane.b32.xlu1 %v1114_v47, %s950_s7 }
  0xa5   : > { %517 = vrot.lane.b32.xlu2 %v1116_v48, %s952_s9 }
  0xa6   : > { %542 = vrot.lane.b32.xlu0 %v1134_v54, %s953_s10  ;;  %v1250_v17 = vpop.permute.xlu1 %415 }
  0xa7   : > { %v1252_v18 = vpop.permute.xlu2 %473 }
  0xa8   : > { %v388_v20 = vpop.permute.xlu0 %387 }
  0xa9   : > { %v1261_v22 = vsel %vm572_vm3, %v566_v16, %v388_v20 }
  0xac   : > { %446 = vrot.lane.b32.xlu1 %v1064_v31, %s949_s6 }
  0xad   : > { %500 = vrot.lane.b32.xlu2 %v1118_v49, %s951_s8 }
  0xae   : > { %525 = vrot.lane.b32.xlu0 %v1142_v55, %s952_s9  ;;  %v1275_v25 = vpop.permute.xlu1 %423  ;;  %v332_v55 = vld [vmem:[#allocation2 + $0x91] sm:$0xff] }
  0xaf   : > { %v1277_v26 = vpop.permute.xlu2 %444 }
  0xb0   : > { %v364_v28 = vpop.permute.xlu0 %363 }
  0xb1   : > { %v570_v47 = vsel %vm276_vm0, %v1106_v46, %v364_v28  ;;  %v568_v46 = vsel %vm276_vm0, %v1144_v56, %v1226_v9 }
  0xb4   : > { %429 = vrot.lane.b32.xlu1 %v1165_v58, %s948_s30  ;;  %v577_v58 = vsel %vm572_vm3, %v568_v46, %v1175_v60 }
  0xb5   : > { %471 = vrot.lane.b32.xlu2 %v1066_v32, %s950_s7  ;;  %v313_v32 = vld [vmem:[#allocation2] sm:$0xff]  ;;  %v586_v56 = vsel %vm581_vm4, %v577_v58, %v1275_v25 }
  0xb6   : > { %550 = vrot.lane.b32.xlu0 %v1146_v57, %s953_s10  ;;  %v449_v29 = vpop.permute.xlu1 %448  ;;  %v564_v38 = vsel %vm276_vm0, %v313_v32, %v1177_v61 }
  0xb7   : > { %v354_v30 = vpop.permute.xlu2 %353  ;;  %v573_v41 = vsel %vm572_vm3, %v564_v38, %v1202_v2  ;;  %v595_v1 = vsel %vm590_vm5, %v586_v56, %v449_v29 }
  0xb8   : > { %v516_v31 = vpop.permute.xlu0 %515  ;;  %v582_v43 = vsel %vm581_vm4, %v573_v41, %v1250_v17  ;;  %v604_v60 = vsel %vm599_vm6, %v595_v1, %v1252_v18 }
  0xb9   : > { %v591_v51 = vsel %vm590_vm5, %v582_v43, %v1185_v62 }
  0xbc   : > { %454 = vrot.lane.b32.xlu1 %v1167_v59, %s949_s6 }
  0xbd   : > { %496 = vrot.lane.b32.xlu2 %v1084_v39, %s951_s8 }
  0xbe   : > { %504 = vrot.lane.b32.xlu0 %v322_v33, %s951_s8  ;;  %v420_v34 = vpop.permute.xlu1 %419 }
  0xbf   : > { %v524_v35 = vpop.permute.xlu2 %523  ;;  %v584_v12 = vsel %vm581_vm4, %v1261_v22, %v420_v34 }
  0xc0   : > { %v499_v37 = vpop.permute.xlu0 %498  ;;  %v593_v15 = vsel %vm590_vm5, %v584_v12, %v1277_v26 }
  0xc4   : > { %479 = vrot.lane.b32.xlu1 %v1215_v7, %s950_s7  ;;  %s1394_s7 = scalar_lea.vmem %s1440_s4, %s868_s20  ;;  %s857_s20 = sshll.u32 %s1443_s19, 1 }
  0xc5   : > { %521 = vrot.lane.b32.xlu2 %v1093_v42, %s952_s9  ;;  %v600_v42 = vsel %vm599_vm6, %v591_v51, %v1204_v3  ;;  %v613_v3 = vsel %vm608_vm7, %v604_v60, %v499_v37 }
  0xc6   : > { %554 = vrot.lane.b32.xlu0 %v342_v40, %s953_s10  ;;  %v396_v48 = vpop.permute.xlu1 %395  ;;  %v609_v57 = vsel %vm608_vm7, %v600_v42, %v1228_v10  ;;  %v622_v7 = vsel %vm617_vm8, %v613_v3, %v524_v35 }
  0xc7   : > { %v495_v50 = vpop.permute.xlu2 %494  ;;  %v579_v52 = vsel %vm572_vm3, %v570_v47, %v396_v48  ;;  %v618_v59 = vsel %vm617_vm8, %v609_v57, %v516_v31 }
  0xc8   : > { %v428_v53 = vpop.permute.xlu0 %427 }
  0xc9   : > { %v588_v54 = vsel %vm581_vm4, %v579_v52, %v428_v53 }
  0xcc   : > { %546 = vrot.lane.b32.xlu1 %v1104_v45, %s953_s10  ;;  %v565_v45 = vsel %vm276_vm0, %v1075_v36, %v354_v30  ;;  %s235_s10 = scalar_lea.vmem %s1441_s5, %s857_s20 }
  0xcd   : > { %529 = vrot.lane.b32.xlu2 %v332_v55, %s952_s9 }
  0xce   : > { %v541_v61 = vpop.permute.xlu1 %540 }
  0xcf   : > { %v418_v62 = vpop.permute.xlu2 %417  ;;  %v627_v63 = vsel %vm626_vm9, %v618_v59, %v541_v61 }
  0xd0   : > { %v386_v0 = vpop.permute.xlu0 %385  ;;  %858 = vmatmul.msk.f32.vlgmr.msra.gmra.mxu0 %vm635_vm10, %v627_v63 }
  0xd1   : > { %v574_v2 = vsel %vm572_vm3, %v565_v45, %v386_v0 }
  0xd2   : > { %v583_v37 = vsel %vm581_vm4, %v574_v2, %v418_v62 }
  0xd6   : > { %v470_v4 = vpop.permute.xlu1 %469 }
  0xd7   : > { %v394_v5 = vpop.permute.xlu2 %393  ;;  %v602_v16 = vsel %vm599_vm6, %v593_v15, %v470_v4 }
  0xd8   : > { %v549_v6 = vpop.permute.xlu0 %548  ;;  %v611_v17 = vsel %vm608_vm7, %v602_v16, %v495_v50 }
  0xd9   : > { %v631_v36 = vsel %vm626_vm9, %v622_v7, %v549_v6 }
  0xda   : > { %862 = vmatmul.msk.f32.vlgmr.msra.gmra.mxu2 %vm635_vm10, %v631_v36 }
  0xde   : > { %v453_v8 = vpop.permute.xlu1 %452 }
  0xdf   : > { %v545_v9 = vpop.permute.xlu2 %544  ;;  %v597_v31 = vsel %vm590_vm5, %v588_v54, %v453_v8 }
  0xe0   : > { %v478_v10 = vpop.permute.xlu0 %477 }
  0xe1   : > { %v606_v33 = vsel %vm599_vm6, %v597_v31, %v478_v10 }
  0xe6   : > { %v362_v11 = vpop.permute.xlu1 %361 }
  0xe7   : > { %v468_v14 = vpop.permute.xlu2 %467  ;;  %v569_v55 = vsel %vm276_vm0, %v1084_v39, %v362_v11 }
  0xe8   : > { %v443_v13 = vpop.permute.xlu0 %442  ;;  %v578_v42 = vsel %vm572_vm3, %v569_v55, %v394_v5 }
  0xe9   : > { %v592_v41 = vsel %vm590_vm5, %v583_v37, %v443_v13 }
  0xea   : > { %v601_v47 = vsel %vm599_vm6, %v592_v41, %v468_v14 }
  0xee   : > { %v520_v18 = vpop.permute.xlu1 %519 }
  0xef   : > { %v620_v19 = vsel %vm617_vm8, %v611_v17, %v520_v18  ;;  %v451_v23 = vpop.permute.xlu2 %450 }
  0xf0   : > { %v358_v20 = vpop.permute.xlu0 %357  ;;  %v629_v21 = vsel %vm626_vm9, %v620_v19, %v545_v9 }
  0xf1   : > { %860 = vmatmul.msk.f32.vlgmr.msra.gmra.mxu1 %vm635_vm10, %v629_v21  ;;  %v567_v3 = vsel %vm276_vm0, %v1102_v44, %v358_v20 }
  0xf6   : > { %v503_v24 = vpop.permute.xlu1 %502 }
  0xf7   : > { %v366_v25 = vpop.permute.xlu2 %365  ;;  %v615_v32 = vsel %vm608_vm7, %v606_v33, %v503_v24 }
  0xf8   : > { %v528_v22 = vpop.permute.xlu0 %527  ;;  %v571_v4 = vsel %vm276_vm0, %v1118_v49, %v366_v25 }
  0xf9   : > { %v624_v34 = vsel %vm617_vm8, %v615_v32, %v528_v22 }
  0xfe   : > { %v426_v27 = vpop.permute.xlu1 %425 }
  0xff   : > { %v518_v29 = vpop.permute.xlu2 %517  ;;  %v587_v57 = vsel %vm581_vm4, %v578_v42, %v426_v27 }
 0x100   : > { %v493_v28 = vpop.permute.xlu0 %492  ;;  %v596_v59 = vsel %vm590_vm5, %v587_v57, %v451_v23 }
 0x101   : > { %v610_v48 = vsel %vm608_vm7, %v601_v47, %v493_v28 }
 0x102   : > { %v619_v52 = vsel %vm617_vm8, %v610_v48, %v518_v29 }
 0x106   : > { %v390_v26 = vpop.permute.xlu1 %389 }
 0x107   : > { %v501_v43 = vpop.permute.xlu2 %500  ;;  %v576_v5 = vsel %vm572_vm3, %v567_v3, %v390_v26 }
 0x108   : > { %v422_v30 = vpop.permute.xlu0 %421 }
 0x109   : > { %v585_v6 = vsel %vm581_vm4, %v576_v5, %v422_v30 }
 0x10e   : > { %v553_v35 = vpop.permute.xlu1 %552 }
 0x10f   : > { %v633_v38 = vsel %vm626_vm9, %v624_v34, %v553_v35  ;;  %v472_v54 = vpop.permute.xlu2 %471 }
 0x110   : > { %v398_v40 = vpop.permute.xlu0 %397  ;;  %864 = vmatmul.msk.f32.vlgmr.msra.gmra.mxu3 %vm635_vm10, %v633_v38 }
 0x111   : > { %v580_v7 = vsel %vm572_vm3, %v571_v4, %v398_v40 }
 0x116   : > { %v476_v50 = vpop.permute.xlu1 %475 }
 0x117   : > { %v605_v61 = vsel %vm599_vm6, %v596_v59, %v476_v50  ;;  %v497_v62 = vpop.permute.xlu2 %496 }
 0x118   : > { %v543_v51 = vpop.permute.xlu0 %542  ;;  %v614_v56 = vsel %vm608_vm7, %v605_v61, %v501_v43 }
 0x119   : > { %v628_v53 = vsel %vm626_vm9, %v619_v52, %v543_v51 }
 0x11a   : > { %859 = vmatmul.msk.f32.gmra.mxu0 %vm635_vm10, %v628_v53 }
 0x11e   : > { %v447_v46 = vpop.permute.xlu1 %446 }
 0x11f   : > { %v522_v39 = vpop.permute.xlu2 %521  ;;  %v594_v36 = vsel %vm590_vm5, %v585_v6, %v447_v46 }
 0x120   : > { %v526_v58 = vpop.permute.xlu0 %525  ;;  %v603_v49 = vsel %vm599_vm6, %v594_v36, %v472_v54 }
 0x121   : > { %v623_v63 = vsel %vm617_vm8, %v614_v56, %v526_v58  ;;  %v612_v16 = vsel %vm608_vm7, %v603_v49, %v497_v62 }
 0x122   : > { %v621_v17 = vsel %vm617_vm8, %v612_v16, %v522_v39 }
 0x126   : > { %v430_v45 = vpop.permute.xlu1 %429 }
 0x127   : > { %v589_v8 = vsel %vm581_vm4, %v580_v7, %v430_v45  ;;  %v530_v11 = vpop.permute.xlu2 %529 }
 0x128   : > { %v551_v0 = vpop.permute.xlu0 %550 }
 0x129   : > { %v632_v1 = vsel %vm626_vm9, %v623_v63, %v551_v0 }
 0x12a   : > { %863 = vmatmul.msk.f32.gmra.mxu2 %vm635_vm10, %v632_v1 }
 0x12e   : > { %v455_v2 = vpop.permute.xlu1 %454 }
 0x12f   : > { %v598_v9 = vsel %vm590_vm5, %v589_v8, %v455_v2 }
 0x130   : > { %v505_v60 = vpop.permute.xlu0 %504 }
 0x136   : > { %v480_v10 = vpop.permute.xlu1 %479 }
 0x137   : > { %v607_v44 = vsel %vm599_vm6, %v598_v9, %v480_v10 }
 0x138   : > { %v555_v12 = vpop.permute.xlu0 %554  ;;  %v616_v13 = vsel %vm608_vm7, %v607_v44, %v505_v60 }
 0x139   : > { %v625_v14 = vsel %vm617_vm8, %v616_v13, %v530_v11 }
 0x13a   : > { %v634_v15 = vsel %vm626_vm9, %v625_v14, %v555_v12 }
 0x13b   : > { %865 = vmatmul.msk.f32.gmra.mxu3 %vm635_vm10, %v634_v15 }
 0x13e   : > { %v547_v18 = vpop.permute.xlu1 %546 }
 0x13f   : > { %v630_v19 = vsel %vm626_vm9, %v621_v17, %v547_v18 }
 0x140   : > { %861 = vmatmul.msk.f32.gmra.mxu1 %vm635_vm10, %v630_v19 }
 0x14d   : > { %v677_v20 = vpop.f32.mrf.mxu0 }
 0x14e   : > { %754 = vst.msk [vmem:[%s1394_s7] sm:$0xff] %vm276_vm0, %v677_v20  ;;  %v722_v28 = vmul.f32 %v677_v20, %v677_v20  ;;  %v701_v26 = vsel %vm276_vm0, %v677_v20, 0.0 }
 0x150   : > { %v730_v33 = vsel %vm276_vm0, %v722_v28, 0.0 }
 0x15d   : > { %v689_v21 = vpop.f32.mrf.mxu2 }
 0x15e   : > { %758 = vst.msk [vmem:[%s1394_s7 + $0x20] sm:$0xff] %vm276_vm0, %v689_v21  ;;  %v726_v40 = vmul.f32 %v689_v21, %v689_v21  ;;  %v708_v52 = vsel %vm276_vm0, %v689_v21, 0.0 }
 0x160   : > { %v737_v46 = vsel %vm276_vm0, %v726_v40, 0.0 }
 0x16e   : > { %v683_v23 = vpop.f32.mrf.mxu1 }
 0x16f   : > { %756 = vst.msk [vmem:[%s1394_s7 + $0x10] sm:$0xff] %vm276_vm0, %v683_v23  ;;  %v724_v32 = vmul.f32 %v683_v23, %v683_v23  ;;  %v704_v35 = vsel %vm276_vm0, %v683_v23, 0.0 }
 0x171   : > { %v733_v41 = vsel %vm276_vm0, %v724_v32, 0.0 }
 0x193   : > { %v695_v24 = vpop.f32.mrf.mxu3 }
 0x194   : > { %760 = vst.msk [vmem:[%s1394_s7 + $0x30] sm:$0xff] %vm276_vm0, %v695_v24  ;;  %v728_v57 = vmul.f32 %v695_v24, %v695_v24  ;;  %v712_v62 = vsel %vm276_vm0, %v695_v24, 0.0 }
 0x196   : > { %v741_v1 = vsel %vm276_vm0, %v728_v57, 0.0 }
 0x197   : > { %v680_v22 = vpop.f32.mrf.mxu0 }
 0x198   : > { %755 = vst.msk [vmem:[%s1394_s7 + $0x8] sm:$0xff] %vm276_vm0, %v680_v22  ;;  %v723_v27 = vmul.f32 %v680_v22, %v680_v22  ;;  %v702_v29 = vsel %vm276_vm0, %v680_v22, 0.0 }
 0x199   : > { %v703_v31 = vadd.f32 %v702_v29, %v701_v26 }
 0x19a   : > { %v731_v30 = vsel %vm276_vm0, %v723_v27, 0.0 }
 0x19b   : > { %v732_v34 = vadd.f32 %v731_v30, %v730_v33  ;;  %v705_v38 = vadd.f32 %v704_v35, %v703_v31 }
 0x19d   : > { %v734_v51 = vadd.f32 %v733_v41, %v732_v34 }
 0x1ad   : > { %v692_v25 = vpop.f32.mrf.mxu2 }
 0x1ae   : > { %759 = vst.msk [vmem:[%s1394_s7 + $0x28] sm:$0xff] %vm276_vm0, %v692_v25  ;;  %v727_v53 = vmul.f32 %v692_v25, %v692_v25  ;;  %v710_v58 = vsel %vm276_vm0, %v692_v25, 0.0 }
 0x1b0   : > { %v739_v56 = vsel %vm276_vm0, %v727_v53, 0.0 }
 0x1bd   : > { %v686_v37 = vpop.f32.mrf.mxu1 }
 0x1be   : > { %v706_v43 = vsel %vm276_vm0, %v686_v37, 0.0  ;;  %v725_v47 = vmul.f32 %v686_v37, %v686_v37  ;;  %757 = vst.msk [vmem:[%s1394_s7 + $0x18] sm:$0xff] %vm276_vm0, %v686_v37  ;;  %v698_v48 = vpop.f32.mrf.mxu3 }
 0x1bf   : > { %v707_v50 = vadd.f32 %v706_v43, %v705_v38  ;;  %761 = vst.msk [vmem:[%s1394_s7 + $0x38] sm:$0xff] %vm276_vm0, %v698_v48  ;;  %v729_v45 = vmul.f32 %v698_v48, %v698_v48  ;;  %v714_v39 = vsel %vm276_vm0, %v698_v48, 0.0 }
 0x1c0   : > { %v735_v54 = vsel %vm276_vm0, %v725_v47, 0.0 }
 0x1c1   : > { %v709_v55 = vadd.f32 %v708_v52, %v707_v50  ;;  %v736_v42 = vadd.f32 %v735_v54, %v734_v51  ;;  %v743_v3 = vsel %vm276_vm0, %v729_v45, 0.0 }
 0x1c3   : > { %v738_v59 = vadd.f32 %v737_v46, %v736_v42  ;;  %v711_v61 = vadd.f32 %v710_v58, %v709_v55 }
 0x1c5   : > { %v713_v63 = vadd.f32 %v712_v62, %v711_v61  ;;  %v740_v0 = vadd.f32 %v739_v56, %v738_v59 }
 0x1c7   : > { %v715_v2 = vadd.f32 %v714_v39, %v713_v63  ;;  %v742_v60 = vadd.f32 %v741_v1, %v740_v0 }
 0x1c9   : > { %v716_v4 = vrot.slane %v715_v2, 4  ;;  %v744_v5 = vadd.f32 %v743_v3, %v742_v60 }
 0x1cb   : > { %v717_v6 = vadd.f32 %v716_v4, %v715_v2  ;;  %v745_v7 = vrot.slane %v744_v5, 4 }
 0x1cd   : > { %v718_v36 = vrot.slane %v717_v6, 2  ;;  %v746_v8 = vadd.f32 %v745_v7, %v744_v5 }
 0x1cf   : > { %v719_v9 = vadd.f32 %v718_v36, %v717_v6  ;;  %v747_v10 = vrot.slane %v746_v8, 2 }
 0x1d1   : > { %v720_v11 = vrot.slane %v719_v9, 1  ;;  %v748_v44 = vadd.f32 %v747_v10, %v746_v8 }
 0x1d3   : > { %v749_v12 = vrot.slane %v748_v44, 1  ;;  %v721_v49 = vadd.f32 %v720_v11, %v719_v9 }
 0x1d5   : > { %v750_v13 = vadd.f32 %v749_v12, %v748_v44 }
 0x1d7   : > { %v752_v14 = vsel %vm751_vm11, %v721_v49, %v750_v13 }
 0x1d8   : > { %753 = vst.msk [vmem:[%s235_s10] sm:$0x3] %vm278_vm1, %v752_v14 }
 0x1d9 PF: > { %s16_s18 = sadd.s32 1, %s943_s18  }
 0x1da   : > { %p13_p4 = scmp.ge.s32.totalorder %s16_s18, 4  }
 0x1dc   :  { %15 = sbr.rel (!%p13_p4) target bundleno = 1 (0x1), region = 80 }

</bundles_post_ra>
